<compile_context>
chip_gen: v7x
topology: tpu7x:2x2x1
jax: 0.10.0
libtpu: 0.0.40
codegen_flags: <defaults>
</compile_context>

<pallas_src>
import functools

import jax
import jax.numpy as jnp
from jax import lax
from jax.experimental import pallas as pl
from jax.experimental.pallas import tpu as pltpu

TAU = 2.0  # LIF time constant


# ----------------------------------------------------------------------------
# VMEM budgeting helpers
# ----------------------------------------------------------------------------
def _vmem_budget():
    """(vmem_limit_bytes for CompilerParams, tile-selection budget)."""
    phys = 64 * 1024 * 1024  # conservative default (v7x physical VMEM)
    try:
        info = pltpu.get_tpu_info()
        cap = getattr(info, "vmem_capacity_bytes", None)
        if isinstance(cap, int) and cap > 0:
            phys = cap
    except Exception:
        pass
    limit = int(min(phys // 2, 64 * 1024 * 1024))   # 64 MiB v5e/v6e, 32 MiB v7x
    return limit, limit // 2


def _pick_tile_m(M, per_row_bytes, fixed_bytes, budget, cap=1024):
    """Largest row tile whose working set fits the budget (counts f32 streams,
    double-buffered weights and hidden temporaries)."""
    avail = max(budget - fixed_bytes, 8 * per_row_bytes)
    tm = min(cap, avail // max(per_row_bytes, 1), M)
    tm = max(8, (tm // 8) * 8)
    if tm >= M and M > 8:
        # keep >= 2 blocks on the "parallel" axis (v7x has 2 TensorCores)
        tm = max(8, ((M // 2) // 8) * 8)
    return int(tm)


def _pad_rows(a, Mp):
    T, M, C = a.shape
    if Mp == M:
        return a
    return jnp.pad(a, ((0, 0), (0, Mp - M), (0, 0)))


# ----------------------------------------------------------------------------
# Kernel 1: fully fused SSA
#   q/k/v Linear->BN->LIF, per-head attention, attn_lif(thr=0.5),
#   proj Linear->BN->LIF, + residual x.
# Grid = (B//tb, T): batch tiles parallel, T innermost ("arbitrary") because all
# five membrane scratches are carried across T.
# ----------------------------------------------------------------------------
def _ssa_fused_kernel(x_ref,
                      wq_ref, sq_ref, bq_ref,
                      wk_ref, sk_ref, bk_ref,
                      wv_ref, sv_ref, bv_ref,
                      wp_ref, sp_ref, bp_ref,
                      out_ref,
                      vq_ref, vk_ref, vv_ref, va_ref, vp_ref,
                      qs_ref, ks_ref, vs_ref, as_ref,
                      *, num_heads, seq_len, scale, tau):
    t = pl.program_id(1)

    @pl.when(t == 0)
    def _():
        vq_ref[...] = jnp.zeros_like(vq_ref)
        vk_ref[...] = jnp.zeros_like(vk_ref)
        vv_ref[...] = jnp.zeros_like(vv_ref)
        va_ref[...] = jnp.zeros_like(va_ref)
        vp_ref[...] = jnp.zeros_like(vp_ref)

    inv_tau = 1.0 / tau
    x = x_ref[...]                              # (R, C) f32, R = tb*N
    xb = x.astype(jnp.bfloat16)
    R, C = x.shape
    N = seq_len
    tb = R // N
    hd = C // num_heads

    def lin_bn(a_bf16, wref, sref, bref):
        h = jnp.dot(a_bf16, wref[...], preferred_element_type=jnp.float32)
        return h * sref[...] + bref[...]

    def lif_full(h, vref, thr):
        v0 = vref[...]
        v = v0 + (h - v0) * inv_tau
        fired = v >= thr
        vref[...] = jnp.where(fired, 0.0, v)
        return jnp.where(fired, 1.0, 0.0)

    # q/k/v projections: x streamed once, spikes stored as bf16 VMEM scratches
    qs_ref[...] = lif_full(lin_bn(xb, wq_ref, sq_ref, bq_ref), vq_ref, 1.0).astype(jnp.bfloat16)
    ks_ref[...] = lif_full(lin_bn(xb, wk_ref, sk_ref, bk_ref), vk_ref, 1.0).astype(jnp.bfloat16)
    vs_ref[...] = lif_full(lin_bn(xb, wv_ref, sv_ref, bv_ref), vv_ref, 1.0).astype(jnp.bfloat16)

    # attention + attn_lif per batch element in the tile (all heads per element)
    for b in range(tb):
        rows = pl.ds(b * N, N)
        qb = qs_ref[rows, :]
        kb = ks_ref[rows, :]
        vb = vs_ref[rows, :]
        outs = []
        for h in range(num_heads):
            sl = slice(h * hd, (h + 1) * hd)
            # contract last dims of both operands (no explicit transpose)
            s = lax.dot_general(qb[:, sl], kb[:, sl], (((1,), (1,)), ((), ())),
                                preferred_element_type=jnp.float32)
            # scores are exact small integers -> bf16 exact; scale applied after
            o = jnp.dot(s.astype(jnp.bfloat16), vb[:, sl],
                        preferred_element_type=jnp.float32) * scale
            outs.append(o)
        o_full = jnp.concatenate(outs, axis=-1)        # (N, C), lane-dense

        v0 = va_ref[rows, :]
        vm = v0 + (o_full - v0) * inv_tau
        fired = vm >= 0.5                               # attn_lif threshold
        va_ref[rows, :] = jnp.where(fired, 0.0, vm)
        as_ref[rows, :] = jnp.where(fired, 1.0, 0.0).astype(jnp.bfloat16)

    # proj path + proj_lif + first residual
    p = lin_bn(as_ref[...], wp_ref, sp_ref, bp_ref)
    spike = lif_full(p, vp_ref, 1.0)
    out_ref[...] = (spike + x).astype(out_ref.dtype)


def ssa_forward(xf, params, *, B, N, scale=0.125, tau=TAU):
    T, M, C = xf.shape
    H = params["num_heads"]
    assert (N % 8 == 0) or (B == 1), "sequence tile must respect (8,128) tiling"
    limit, budget = _vmem_budget()

    # choose how many batch elements per grid step (amortize per-step overhead)
    fixed = 4 * C * C * 2 * 2 + 16 * C            # 4 weights bf16, double-buffered
    per_row = 64 * C                              # f32 in/out (2 bufs), 5 membranes,
                                                  # 4 bf16 scratches, temporaries
    tb = 1
    for cand in range(1, min(B, 4) + 1):
        if B % cand:
            continue
        if B >= 2 and B // cand < 2:              # keep >= 2 parallel blocks
            continue
        if cand * N * per_row + fixed <= budget:
            tb = cand
    R = tb * N

    kernel = functools.partial(_ssa_fused_kernel, num_heads=H, seq_len=N,
                               scale=scale, tau=tau)

    xspec = pl.BlockSpec((None, R, C), lambda b, t: (t, b, 0))
    wspec = pl.BlockSpec((C, C), lambda b, t: (0, 0))
    cspec = pl.BlockSpec((1, C), lambda b, t: (0, 0))

    return pl.pallas_call(
        kernel,
        out_shape=jax.ShapeDtypeStruct((T, M, C), jnp.float32),
        grid_spec=pltpu.PrefetchScalarGridSpec(
            num_scalar_prefetch=0,
            grid=(B // tb, T),                    # T innermost: LIF recurrences
            in_specs=[xspec,
                      wspec, cspec, cspec,        # q
                      wspec, cspec, cspec,        # k
                      wspec, cspec, cspec,        # v
                      wspec, cspec, cspec],       # proj
            out_specs=pl.BlockSpec((None, R, C), lambda b, t: (t, b, 0)),
            scratch_shapes=[pltpu.VMEM((R, C), jnp.float32)] * 5      # membranes
                         + [pltpu.VMEM((R, C), jnp.bfloat16)] * 4,    # q/k/v/att spikes
        ),
        compiler_params=pltpu.CompilerParams(
            dimension_semantics=("parallel", "arbitrary"),
            vmem_limit_bytes=limit,
        ),
    )(xf,
      params["q_w"], params["q_scale"], params["q_shift"],
      params["k_w"], params["k_scale"], params["k_shift"],
      params["v_w"], params["v_scale"], params["v_shift"],
      params["proj_w"], params["proj_scale"], params["proj_shift"])


# ----------------------------------------------------------------------------
# Kernel 2: fused MLP  fc1->BN->LIF -> fc2->BN->LIF -> + residual
# The (tm, hidden) activation never leaves VMEM; x1 is read once (input+residual).
# Grid = (Mp//tm, T): M tiles parallel, T innermost for both membranes.
# ----------------------------------------------------------------------------
def _mlp_fused_kernel(x_ref, w1_ref, s1_ref, b1_ref, w2_ref, s2_ref, b2_ref,
                      out_ref, v1_ref, v2_ref, *, tau):
    t = pl.program_id(1)

    @pl.when(t == 0)
    def _():
        v1_ref[...] = jnp.zeros_like(v1_ref)
        v2_ref[...] = jnp.zeros_like(v2_ref)

    inv_tau = 1.0 / tau
    x = x_ref[...]                                    # (tm, C) f32

    h1 = jnp.dot(x.astype(jnp.bfloat16), w1_ref[...],
                 preferred_element_type=jnp.float32)
    h1 = h1 * s1_ref[...] + b1_ref[...]
    v1 = v1_ref[...] + (h1 - v1_ref[...]) * inv_tau
    f1 = v1 >= 1.0
    v1_ref[...] = jnp.where(f1, 0.0, v1)
    sp1 = jnp.where(f1, 1.0, 0.0).astype(jnp.bfloat16)   # hidden spikes stay in VMEM

    h2 = jnp.dot(sp1, w2_ref[...], preferred_element_type=jnp.float32)
    h2 = h2 * s2_ref[...] + b2_ref[...]
    v2 = v2_ref[...] + (h2 - v2_ref[...]) * inv_tau
    f2 = v2 >= 1.0
    v2_ref[...] = jnp.where(f2, 0.0, v2)
    out_ref[...] = (jnp.where(f2, 1.0, 0.0) + x).astype(out_ref.dtype)


def mlp_forward(x1, params, *, tau=TAU):
    T, M, C = x1.shape
    Ch = params["hidden"]
    limit, budget = _vmem_budget()

    # per-row bytes: f32 in/out (2 bufs each), membranes v1/v2, hidden temporaries
    per_row = 8 * C + 8 * C + 4 * Ch + 4 * C + 10 * Ch + 8 * C
    fixed = 2 * (C * Ch + Ch * C) * 2                # bf16 weights, double-buffered
    tm = _pick_tile_m(M, per_row, fixed, budget)
    Mp = int(pl.cdiv(M, tm)) * tm
    xp = _pad_rows(x1, Mp)                           # ragged M -> pad, never full-M tile

    kernel = functools.partial(_mlp_fused_kernel, tau=tau)
    out = pl.pallas_call(
        kernel,
        out_shape=jax.ShapeDtypeStruct((T, Mp, C), jnp.float32),
        grid_spec=pltpu.PrefetchScalarGridSpec(
            num_scalar_prefetch=0,
            grid=(Mp // tm, T),                      # T innermost: LIF recurrences
            in_specs=[
                pl.BlockSpec((None, tm, C), lambda m, t: (t, m, 0)),
                pl.BlockSpec((C, Ch), lambda m, t: (0, 0)),
                pl.BlockSpec((1, Ch), lambda m, t: (0, 0)),
                pl.BlockSpec((1, Ch), lambda m, t: (0, 0)),
                pl.BlockSpec((Ch, C), lambda m, t: (0, 0)),
                pl.BlockSpec((1, C), lambda m, t: (0, 0)),
                pl.BlockSpec((1, C), lambda m, t: (0, 0)),
            ],
            out_specs=pl.BlockSpec((None, tm, C), lambda m, t: (t, m, 0)),
            scratch_shapes=[pltpu.VMEM((tm, Ch), jnp.float32),   # fc1_lif membrane
                            pltpu.VMEM((tm, C), jnp.float32)],   # fc2_lif membrane
        ),
        compiler_params=pltpu.CompilerParams(
            dimension_semantics=("parallel", "arbitrary"),
            vmem_limit_bytes=limit,
        ),
    )(xp, params["fc1_w"], params["fc1_scale"], params["fc1_shift"],
      params["fc2_w"], params["fc2_scale"], params["fc2_shift"])
    return out[:, :M, :] if Mp != M else out


# ----------------------------------------------------------------------------
# Block forward
# ----------------------------------------------------------------------------
def block_forward(x, params):
    T, B, N, C = x.shape
    M = B * N
    xf = x.reshape(T, M, C)
    x1 = ssa_forward(xf, params, B=B, N=N, scale=0.125)   # x + attn(x)
    x2 = mlp_forward(x1, params)                          # x1 + mlp(x1)
    return x2.reshape(T, B, N, C)


# ----------------------------------------------------------------------------
# Pure-JAX reference (mirrors the kernel's bf16 matmul / f32 accumulate casts)
# ----------------------------------------------------------------------------
def _lif_ref(x, tau, thr):
    def step(vm, xt):
        vm = vm + (xt - vm) * (1.0 / tau)
        fired = vm >= thr
        spike = jnp.where(fired, 1.0, 0.0)
        return jnp.where(fired, 0.0, vm), spike
    _, spikes = jax.lax.scan(step, jnp.zeros_like(x[0]), x)
    return spikes


def block_reference(x, params):
    T, B, N, C = x.shape
    H = params["num_heads"]
    hd = C // H
    M = B * N
    xf = x.reshape(T, M, C)

    def lin_bn(a, name):
        h = jnp.dot(a.astype(jnp.bfloat16), params[name + "_w"],
                    preferred_element_type=jnp.float32)
        return h * params[name + "_scale"] + params[name + "_shift"]

    q = _lif_ref(lin_bn(xf, "q"), TAU, 1.0)
    k = _lif_ref(lin_bn(xf, "k"), TAU, 1.0)
    v = _lif_ref(lin_bn(xf, "v"), TAU, 1.0)

    def heads(a):
        return a.reshape(T, B, N, H, hd).transpose(0, 1, 3, 2, 4).astype(jnp.bfloat16)

    qh, kh, vh = heads(q), heads(k), heads(v)
    s = jnp.einsum("tbhnd,tbhmd->tbhnm", qh, kh,
                   preferred_element_type=jnp.float32)
    o = jnp.einsum("tbhnm,tbhmd->tbhnd", s.astype(jnp.bfloat16), vh,
                   preferred_element_type=jnp.float32) * 0.125
    o = o.transpose(0, 1, 3, 2, 4).reshape(T, M, C)
    att = _lif_ref(o, TAU, 0.5)

    x1 = xf + _lif_ref(lin_bn(att, "proj"), TAU, 1.0)
    hm = _lif_ref(lin_bn(x1, "fc1"), TAU, 1.0)
    x2 = x1 + _lif_ref(lin_bn(hm, "fc2"), TAU, 1.0)
    return x2.reshape(T, B, N, C)


# ----------------------------------------------------------------------------
# Deterministic parameter init (BN running stats folded; weights stored bf16)
# ----------------------------------------------------------------------------
def init_params(key, dim, num_heads, mlp_ratio=4.0):
    hidden = int(dim * mlp_ratio)
    layers = [("q", dim, dim), ("k", dim, dim), ("v", dim, dim),
              ("proj", dim, dim), ("fc1", dim, hidden), ("fc2", hidden, dim)]
    params = {"num_heads": num_heads, "hidden": hidden}
    eps = 1e-5
    for name, cin, cout in layers:
        key, kw, kb, kg, kbe, km, kv = jax.random.split(key, 7)
        w = jax.random.normal(kw, (cin, cout), jnp.float32) * 0.3
        b = jax.random.normal(kb, (cout,), jnp.float32) * 0.1
        gamma = 1.0 + 0.1 * jax.random.normal(kg, (cout,), jnp.float32)
        beta = 0.1 * jax.random.normal(kbe, (cout,), jnp.float32)
        rmean = 0.1 * jax.random.normal(km, (cout,), jnp.float32)
        rvar = 1.0 + 0.1 * jax.random.uniform(kv, (cout,), jnp.float32)
        scale = gamma / jnp.sqrt(rvar + eps)          # BN fold (inference)
        shift = (b - rmean) * scale + beta            # Linear bias folded in too
        params[name + "_w"] = w.astype(jnp.bfloat16)  # MXU operand in bf16
        params[name + "_scale"] = scale.reshape(1, cout)
        params[name + "_shift"] = shift.reshape(1, cout)
    return params


if __name__ == "__main__":
    T, B, N, C, H = 4, 2, 8, 32, 4   # small shapes consistent with (T, B, N, dim)
    key = jax.random.PRNGKey(0)
    key, kx, kp = jax.random.split(key, 3)
    x = jax.random.normal(kx, (T, B, N, C), jnp.float32)
    params = init_params(kp, C, H, mlp_ratio=4.0)

    out = jax.block_until_ready(block_forward(x, params))
    ref = jax.block_until_ready(block_reference(x, params))

    err = float(jnp.max(jnp.abs(out - ref)))
    assert out.shape == (T, B, N, C), out.shape
    assert err < 1e-3, f"max abs diff vs reference: {err}"

    print("KERNEL_OK")
</pallas_src>

<mosaic_0001>
module attributes {stable_mosaic.version = 11 : i64} {
  func.func @_ssa_fused_kernel(%arg0: i32, %arg1: i32, %arg2: memref<1x8x32xf32, #tpu.memory_space<vmem>>, %arg3: memref<32x32xbf16, #tpu.memory_space<vmem>>, %arg4: memref<1x32xf32, #tpu.memory_space<vmem>>, %arg5: memref<1x32xf32, #tpu.memory_space<vmem>>, %arg6: memref<32x32xbf16, #tpu.memory_space<vmem>>, %arg7: memref<1x32xf32, #tpu.memory_space<vmem>>, %arg8: memref<1x32xf32, #tpu.memory_space<vmem>>, %arg9: memref<32x32xbf16, #tpu.memory_space<vmem>>, %arg10: memref<1x32xf32, #tpu.memory_space<vmem>>, %arg11: memref<1x32xf32, #tpu.memory_space<vmem>>, %arg12: memref<32x32xbf16, #tpu.memory_space<vmem>>, %arg13: memref<1x32xf32, #tpu.memory_space<vmem>>, %arg14: memref<1x32xf32, #tpu.memory_space<vmem>>, %arg15: memref<1x8x32xf32, #tpu.memory_space<vmem>>, %arg16: memref<8x32xf32, #tpu.memory_space<vmem>>, %arg17: memref<8x32xf32, #tpu.memory_space<vmem>>, %arg18: memref<8x32xf32, #tpu.memory_space<vmem>>, %arg19: memref<8x32xf32, #tpu.memory_space<vmem>>, %arg20: memref<8x32xf32, #tpu.memory_space<vmem>>, %arg21: memref<8x32xbf16, #tpu.memory_space<vmem>>, %arg22: memref<8x32xbf16, #tpu.memory_space<vmem>>, %arg23: memref<8x32xbf16, #tpu.memory_space<vmem>>, %arg24: memref<8x32xbf16, #tpu.memory_space<vmem>>) attributes {dimension_semantics = [#tpu.dimension_semantics<parallel>, #tpu.dimension_semantics<arbitrary>], iteration_bounds = array<i64: 2, 4>, scalar_prefetch = 0 : i64, scratch_operands = 9 : i64, tpu.core_type = #tpu.core_type<tc>, window_params = [{transform_indices = @transform_0, window_bounds = array<i64: 1, 8, 32>}, {pipeline_mode = #tpu.pipeline_mode<synchronous>, transform_indices = @transform_1, window_bounds = array<i64: 32, 32>}, {pipeline_mode = #tpu.pipeline_mode<synchronous>, transform_indices = @transform_2, window_bounds = array<i64: 1, 32>}, {pipeline_mode = #tpu.pipeline_mode<synchronous>, transform_indices = @transform_3, window_bounds = array<i64: 1, 32>}, {pipeline_mode = #tpu.pipeline_mode<synchronous>, transform_indices = @transform_4, window_bounds = array<i64: 32, 32>}, {pipeline_mode = #tpu.pipeline_mode<synchronous>, transform_indices = @transform_5, window_bounds = array<i64: 1, 32>}, {pipeline_mode = #tpu.pipeline_mode<synchronous>, transform_indices = @transform_6, window_bounds = array<i64: 1, 32>}, {pipeline_mode = #tpu.pipeline_mode<synchronous>, transform_indices = @transform_7, window_bounds = array<i64: 32, 32>}, {pipeline_mode = #tpu.pipeline_mode<synchronous>, transform_indices = @transform_8, window_bounds = array<i64: 1, 32>}, {pipeline_mode = #tpu.pipeline_mode<synchronous>, transform_indices = @transform_9, window_bounds = array<i64: 1, 32>}, {pipeline_mode = #tpu.pipeline_mode<synchronous>, transform_indices = @transform_10, window_bounds = array<i64: 32, 32>}, {pipeline_mode = #tpu.pipeline_mode<synchronous>, transform_indices = @transform_11, window_bounds = array<i64: 1, 32>}, {pipeline_mode = #tpu.pipeline_mode<synchronous>, transform_indices = @transform_12, window_bounds = array<i64: 1, 32>}, {transform_indices = @transform_13, window_bounds = array<i64: 1, 8, 32>}]} {
    %c0_i32 = arith.constant 0 : i32
    %0 = arith.cmpi eq, %arg1, %c0_i32 : i32
    %1 = arith.extui %0 : i1 to i32
    %c0_i32_0 = arith.constant 0 : i32
    %2 = arith.cmpi ne, %1, %c0_i32_0 : i32
    scf.if %2 {
      %cst_106 = arith.constant 0.000000e+00 : f32
      %152 = vector.broadcast %cst_106 : f32 to vector<8x32xf32>
      %c0_107 = arith.constant 0 : index
      %c0_108 = arith.constant 0 : index
      %153 = vector.load %arg16[%c0_107, %c0_108] : memref<8x32xf32, #tpu.memory_space<vmem>>, vector<8x32xf32>
      tpu.vector_store %arg16[%c0_107, %c0_108], %152 {strides = array<i32>} : memref<8x32xf32, #tpu.memory_space<vmem>>, vector<8x32xf32>,
      %cst_109 = arith.constant 0.000000e+00 : f32
      %154 = vector.broadcast %cst_109 : f32 to vector<8x32xf32>
      %c0_110 = arith.constant 0 : index
      %c0_111 = arith.constant 0 : index
      %155 = vector.load %arg17[%c0_110, %c0_111] : memref<8x32xf32, #tpu.memory_space<vmem>>, vector<8x32xf32>
      tpu.vector_store %arg17[%c0_110, %c0_111], %154 {strides = array<i32>} : memref<8x32xf32, #tpu.memory_space<vmem>>, vector<8x32xf32>,
      %cst_112 = arith.constant 0.000000e+00 : f32
      %156 = vector.broadcast %cst_112 : f32 to vector<8x32xf32>
      %c0_113 = arith.constant 0 : index
      %c0_114 = arith.constant 0 : index
      %157 = vector.load %arg18[%c0_113, %c0_114] : memref<8x32xf32, #tpu.memory_space<vmem>>, vector<8x32xf32>
      tpu.vector_store %arg18[%c0_113, %c0_114], %156 {strides = array<i32>} : memref<8x32xf32, #tpu.memory_space<vmem>>, vector<8x32xf32>,
      %cst_115 = arith.constant 0.000000e+00 : f32
      %158 = vector.broadcast %cst_115 : f32 to vector<8x32xf32>
      %c0_116 = arith.constant 0 : index
      %c0_117 = arith.constant 0 : index
      %159 = vector.load %arg19[%c0_116, %c0_117] : memref<8x32xf32, #tpu.memory_space<vmem>>, vector<8x32xf32>
      tpu.vector_store %arg19[%c0_116, %c0_117], %158 {strides = array<i32>} : memref<8x32xf32, #tpu.memory_space<vmem>>, vector<8x32xf32>,
      %cst_118 = arith.constant 0.000000e+00 : f32
      %160 = vector.broadcast %cst_118 : f32 to vector<8x32xf32>
      %c0_119 = arith.constant 0 : index
      %c0_120 = arith.constant 0 : index
      %161 = vector.load %arg20[%c0_119, %c0_120] : memref<8x32xf32, #tpu.memory_space<vmem>>, vector<8x32xf32>
      tpu.vector_store %arg20[%c0_119, %c0_120], %160 {strides = array<i32>} : memref<8x32xf32, #tpu.memory_space<vmem>>, vector<8x32xf32>,
    } else {
    }
    %c0 = arith.constant 0 : index
    %c0_1 = arith.constant 0 : index
    %c0_2 = arith.constant 0 : index
    %3 = vector.load %arg2[%c0, %c0_1, %c0_2] : memref<1x8x32xf32, #tpu.memory_space<vmem>>, vector<1x8x32xf32>
    %4 = vector.shape_cast %3 : vector<1x8x32xf32> to vector<8x32xf32>
    %5 = arith.truncf %4 : vector<8x32xf32> to vector<8x32xbf16>
    %c0_3 = arith.constant 0 : index
    %c0_4 = arith.constant 0 : index
    %6 = vector.load %arg3[%c0_3, %c0_4] : memref<32x32xbf16, #tpu.memory_space<vmem>>, vector<32x32xbf16>
    %cst = arith.constant dense<0.000000e+00> : vector<8x32xf32>
    %7 = tpu.matmul %5, %6, %cst {dimension_numbers = #tpu.dot_dimension_numbers<[1], [0], [0], [1], [0, 0, 1, 1], [], []>} : vector<8x32xbf16>, vector<32x32xbf16>, vector<8x32xf32> -> vector<8x32xf32>
    %c0_5 = arith.constant 0 : index
    %c0_6 = arith.constant 0 : index
    %8 = vector.load %arg4[%c0_5, %c0_6] : memref<1x32xf32, #tpu.memory_space<vmem>>, vector<1x32xf32>
    %9 = vector.broadcast %8 : vector<1x32xf32> to vector<8x32xf32>
    %10 = arith.mulf %7, %9 : vector<8x32xf32>
    %c0_7 = arith.constant 0 : index
    %c0_8 = arith.constant 0 : index
    %11 = vector.load %arg5[%c0_7, %c0_8] : memref<1x32xf32, #tpu.memory_space<vmem>>, vector<1x32xf32>
    %12 = vector.broadcast %11 : vector<1x32xf32> to vector<8x32xf32>
    %13 = arith.addf %10, %12 : vector<8x32xf32>
    %c0_9 = arith.constant 0 : index
    %c0_10 = arith.constant 0 : index
    %14 = vector.load %arg16[%c0_9, %c0_10] : memref<8x32xf32, #tpu.memory_space<vmem>>, vector<8x32xf32>
    %15 = arith.subf %13, %14 : vector<8x32xf32>
    %cst_11 = arith.constant 5.000000e-01 : f32
    %16 = vector.broadcast %cst_11 : f32 to vector<8x32xf32>
    %17 = arith.mulf %15, %16 : vector<8x32xf32>
    %18 = arith.addf %14, %17 : vector<8x32xf32>
    %cst_12 = arith.constant 1.000000e+00 : f32
    %19 = vector.broadcast %cst_12 : f32 to vector<8x32xf32>
    %20 = arith.cmpf oge, %18, %19 : vector<8x32xf32>
    %cst_13 = arith.constant 0.000000e+00 : f32
    %21 = vector.broadcast %cst_13 : f32 to vector<8x32xf32>
    %22 = arith.select %20, %21, %18 : vector<8x32xi1>, vector<8x32xf32>
    %c0_14 = arith.constant 0 : index
    %c0_15 = arith.constant 0 : index
    %23 = vector.load %arg16[%c0_14, %c0_15] : memref<8x32xf32, #tpu.memory_space<vmem>>, vector<8x32xf32>
    tpu.vector_store %arg16[%c0_14, %c0_15], %22 {strides = array<i32>} : memref<8x32xf32, #tpu.memory_space<vmem>>, vector<8x32xf32>,
    %cst_16 = arith.constant 1.000000e+00 : f32
    %cst_17 = arith.constant 0.000000e+00 : f32
    %24 = vector.broadcast %cst_16 : f32 to vector<8x32xf32>
    %25 = vector.broadcast %cst_17 : f32 to vector<8x32xf32>
    %26 = arith.select %20, %24, %25 : vector<8x32xi1>, vector<8x32xf32>
    %27 = arith.truncf %26 : vector<8x32xf32> to vector<8x32xbf16>
    %c0_18 = arith.constant 0 : index
    %c0_19 = arith.constant 0 : index
    %28 = vector.load %arg21[%c0_18, %c0_19] : memref<8x32xbf16, #tpu.memory_space<vmem>>, vector<8x32xbf16>
    tpu.vector_store %arg21[%c0_18, %c0_19], %27 {strides = array<i32>} : memref<8x32xbf16, #tpu.memory_space<vmem>>, vector<8x32xbf16>,
    %c0_20 = arith.constant 0 : index
    %c0_21 = arith.constant 0 : index
    %29 = vector.load %arg6[%c0_20, %c0_21] : memref<32x32xbf16, #tpu.memory_space<vmem>>, vector<32x32xbf16>
    %cst_22 = arith.constant dense<0.000000e+00> : vector<8x32xf32>
    %30 = tpu.matmul %5, %29, %cst_22 {dimension_numbers = #tpu.dot_dimension_numbers<[1], [0], [0], [1], [0, 0, 1, 1], [], []>} : vector<8x32xbf16>, vector<32x32xbf16>, vector<8x32xf32> -> vector<8x32xf32>
    %c0_23 = arith.constant 0 : index
    %c0_24 = arith.constant 0 : index
    %31 = vector.load %arg7[%c0_23, %c0_24] : memref<1x32xf32, #tpu.memory_space<vmem>>, vector<1x32xf32>
    %32 = vector.broadcast %31 : vector<1x32xf32> to vector<8x32xf32>
    %33 = arith.mulf %30, %32 : vector<8x32xf32>
    %c0_25 = arith.constant 0 : index
    %c0_26 = arith.constant 0 : index
    %34 = vector.load %arg8[%c0_25, %c0_26] : memref<1x32xf32, #tpu.memory_space<vmem>>, vector<1x32xf32>
    %35 = vector.broadcast %34 : vector<1x32xf32> to vector<8x32xf32>
    %36 = arith.addf %33, %35 : vector<8x32xf32>
    %c0_27 = arith.constant 0 : index
    %c0_28 = arith.constant 0 : index
    %37 = vector.load %arg17[%c0_27, %c0_28] : memref<8x32xf32, #tpu.memory_space<vmem>>, vector<8x32xf32>
    %38 = arith.subf %36, %37 : vector<8x32xf32>
    %cst_29 = arith.constant 5.000000e-01 : f32
    %39 = vector.broadcast %cst_29 : f32 to vector<8x32xf32>
    %40 = arith.mulf %38, %39 : vector<8x32xf32>
    %41 = arith.addf %37, %40 : vector<8x32xf32>
    %cst_30 = arith.constant 1.000000e+00 : f32
    %42 = vector.broadcast %cst_30 : f32 to vector<8x32xf32>
    %43 = arith.cmpf oge, %41, %42 : vector<8x32xf32>
    %cst_31 = arith.constant 0.000000e+00 : f32
    %44 = vector.broadcast %cst_31 : f32 to vector<8x32xf32>
    %45 = arith.select %43, %44, %41 : vector<8x32xi1>, vector<8x32xf32>
    %c0_32 = arith.constant 0 : index
    %c0_33 = arith.constant 0 : index
    %46 = vector.load %arg17[%c0_32, %c0_33] : memref<8x32xf32, #tpu.memory_space<vmem>>, vector<8x32xf32>
    tpu.vector_store %arg17[%c0_32, %c0_33], %45 {strides = array<i32>} : memref<8x32xf32, #tpu.memory_space<vmem>>, vector<8x32xf32>,
    %cst_34 = arith.constant 1.000000e+00 : f32
    %cst_35 = arith.constant 0.000000e+00 : f32
    %47 = vector.broadcast %cst_34 : f32 to vector<8x32xf32>
    %48 = vector.broadcast %cst_35 : f32 to vector<8x32xf32>
    %49 = arith.select %43, %47, %48 : vector<8x32xi1>, vector<8x32xf32>
    %50 = arith.truncf %49 : vector<8x32xf32> to vector<8x32xbf16>
    %c0_36 = arith.constant 0 : index
    %c0_37 = arith.constant 0 : index
    %51 = vector.load %arg22[%c0_36, %c0_37] : memref<8x32xbf16, #tpu.memory_space<vmem>>, vector<8x32xbf16>
    tpu.vector_store %arg22[%c0_36, %c0_37], %50 {strides = array<i32>} : memref<8x32xbf16, #tpu.memory_space<vmem>>, vector<8x32xbf16>,
    %c0_38 = arith.constant 0 : index
    %c0_39 = arith.constant 0 : index
    %52 = vector.load %arg9[%c0_38, %c0_39] : memref<32x32xbf16, #tpu.memory_space<vmem>>, vector<32x32xbf16>
    %cst_40 = arith.constant dense<0.000000e+00> : vector<8x32xf32>
    %53 = tpu.matmul %5, %52, %cst_40 {dimension_numbers = #tpu.dot_dimension_numbers<[1], [0], [0], [1], [0, 0, 1, 1], [], []>} : vector<8x32xbf16>, vector<32x32xbf16>, vector<8x32xf32> -> vector<8x32xf32>
    %c0_41 = arith.constant 0 : index
    %c0_42 = arith.constant 0 : index
    %54 = vector.load %arg10[%c0_41, %c0_42] : memref<1x32xf32, #tpu.memory_space<vmem>>, vector<1x32xf32>
    %55 = vector.broadcast %54 : vector<1x32xf32> to vector<8x32xf32>
    %56 = arith.mulf %53, %55 : vector<8x32xf32>
    %c0_43 = arith.constant 0 : index
    %c0_44 = arith.constant 0 : index
    %57 = vector.load %arg11[%c0_43, %c0_44] : memref<1x32xf32, #tpu.memory_space<vmem>>, vector<1x32xf32>
    %58 = vector.broadcast %57 : vector<1x32xf32> to vector<8x32xf32>
    %59 = arith.addf %56, %58 : vector<8x32xf32>
    %c0_45 = arith.constant 0 : index
    %c0_46 = arith.constant 0 : index
    %60 = vector.load %arg18[%c0_45, %c0_46] : memref<8x32xf32, #tpu.memory_space<vmem>>, vector<8x32xf32>
    %61 = arith.subf %59, %60 : vector<8x32xf32>
    %cst_47 = arith.constant 5.000000e-01 : f32
    %62 = vector.broadcast %cst_47 : f32 to vector<8x32xf32>
    %63 = arith.mulf %61, %62 : vector<8x32xf32>
    %64 = arith.addf %60, %63 : vector<8x32xf32>
    %cst_48 = arith.constant 1.000000e+00 : f32
    %65 = vector.broadcast %cst_48 : f32 to vector<8x32xf32>
    %66 = arith.cmpf oge, %64, %65 : vector<8x32xf32>
    %cst_49 = arith.constant 0.000000e+00 : f32
    %67 = vector.broadcast %cst_49 : f32 to vector<8x32xf32>
    %68 = arith.select %66, %67, %64 : vector<8x32xi1>, vector<8x32xf32>
    %c0_50 = arith.constant 0 : index
    %c0_51 = arith.constant 0 : index
    %69 = vector.load %arg18[%c0_50, %c0_51] : memref<8x32xf32, #tpu.memory_space<vmem>>, vector<8x32xf32>
    tpu.vector_store %arg18[%c0_50, %c0_51], %68 {strides = array<i32>} : memref<8x32xf32, #tpu.memory_space<vmem>>, vector<8x32xf32>,
    %cst_52 = arith.constant 1.000000e+00 : f32
    %cst_53 = arith.constant 0.000000e+00 : f32
    %70 = vector.broadcast %cst_52 : f32 to vector<8x32xf32>
    %71 = vector.broadcast %cst_53 : f32 to vector<8x32xf32>
    %72 = arith.select %66, %70, %71 : vector<8x32xi1>, vector<8x32xf32>
    %73 = arith.truncf %72 : vector<8x32xf32> to vector<8x32xbf16>
    %c0_54 = arith.constant 0 : index
    %c0_55 = arith.constant 0 : index
    %74 = vector.load %arg23[%c0_54, %c0_55] : memref<8x32xbf16, #tpu.memory_space<vmem>>, vector<8x32xbf16>
    tpu.vector_store %arg23[%c0_54, %c0_55], %73 {strides = array<i32>} : memref<8x32xbf16, #tpu.memory_space<vmem>>, vector<8x32xbf16>,
    %c0_56 = arith.constant 0 : index
    %c0_57 = arith.constant 0 : index
    %75 = vector.load %arg21[%c0_56, %c0_57] : memref<8x32xbf16, #tpu.memory_space<vmem>>, vector<8x32xbf16>
    %c0_58 = arith.constant 0 : index
    %c0_59 = arith.constant 0 : index
    %76 = vector.load %arg22[%c0_58, %c0_59] : memref<8x32xbf16, #tpu.memory_space<vmem>>, vector<8x32xbf16>
    %c0_60 = arith.constant 0 : index
    %c0_61 = arith.constant 0 : index
    %77 = vector.load %arg23[%c0_60, %c0_61] : memref<8x32xbf16, #tpu.memory_space<vmem>>, vector<8x32xbf16>
    %78 = vector.extract_strided_slice %75 {offsets = [0, 0], sizes = [8, 8], strides = [1, 1]} : vector<8x32xbf16> to vector<8x8xbf16>
    %79 = vector.extract_strided_slice %76 {offsets = [0, 0], sizes = [8, 8], strides = [1, 1]} : vector<8x32xbf16> to vector<8x8xbf16>
    %cst_62 = arith.constant dense<0.000000e+00> : vector<8x8xf32>
    %80 = tpu.matmul %78, %79, %cst_62 {dimension_numbers = #tpu.dot_dimension_numbers<[1], [1], [0], [0], [0, 0, 1, 0], [], []>} : vector<8x8xbf16>, vector<8x8xbf16>, vector<8x8xf32> -> vector<8x8xf32>
    %81 = arith.truncf %80 : vector<8x8xf32> to vector<8x8xbf16>
    %82 = vector.extract_strided_slice %77 {offsets = [0, 0], sizes = [8, 8], strides = [1, 1]} : vector<8x32xbf16> to vector<8x8xbf16>
    %cst_63 = arith.constant dense<0.000000e+00> : vector<8x8xf32>
    %83 = tpu.matmul %81, %82, %cst_63 {dimension_numbers = #tpu.dot_dimension_numbers<[1], [0], [0], [1], [0, 0, 1, 1], [], []>} : vector<8x8xbf16>, vector<8x8xbf16>, vector<8x8xf32> -> vector<8x8xf32>
    %cst_64 = arith.constant 1.250000e-01 : f32
    %84 = vector.broadcast %cst_64 : f32 to vector<8x8xf32>
    %85 = arith.mulf %83, %84 : vector<8x8xf32>
    %86 = vector.extract_strided_slice %75 {offsets = [0, 8], sizes = [8, 8], strides = [1, 1]} : vector<8x32xbf16> to vector<8x8xbf16>
    %87 = vector.extract_strided_slice %76 {offsets = [0, 8], sizes = [8, 8], strides = [1, 1]} : vector<8x32xbf16> to vector<8x8xbf16>
    %cst_65 = arith.constant dense<0.000000e+00> : vector<8x8xf32>
    %88 = tpu.matmul %86, %87, %cst_65 {dimension_numbers = #tpu.dot_dimension_numbers<[1], [1], [0], [0], [0, 0, 1, 0], [], []>} : vector<8x8xbf16>, vector<8x8xbf16>, vector<8x8xf32> -> vector<8x8xf32>
    %89 = arith.truncf %88 : vector<8x8xf32> to vector<8x8xbf16>
    %90 = vector.extract_strided_slice %77 {offsets = [0, 8], sizes = [8, 8], strides = [1, 1]} : vector<8x32xbf16> to vector<8x8xbf16>
    %cst_66 = arith.constant dense<0.000000e+00> : vector<8x8xf32>
    %91 = tpu.matmul %89, %90, %cst_66 {dimension_numbers = #tpu.dot_dimension_numbers<[1], [0], [0], [1], [0, 0, 1, 1], [], []>} : vector<8x8xbf16>, vector<8x8xbf16>, vector<8x8xf32> -> vector<8x8xf32>
    %cst_67 = arith.constant 1.250000e-01 : f32
    %92 = vector.broadcast %cst_67 : f32 to vector<8x8xf32>
    %93 = arith.mulf %91, %92 : vector<8x8xf32>
    %94 = vector.extract_strided_slice %75 {offsets = [0, 16], sizes = [8, 8], strides = [1, 1]} : vector<8x32xbf16> to vector<8x8xbf16>
    %95 = vector.extract_strided_slice %76 {offsets = [0, 16], sizes = [8, 8], strides = [1, 1]} : vector<8x32xbf16> to vector<8x8xbf16>
    %cst_68 = arith.constant dense<0.000000e+00> : vector<8x8xf32>
    %96 = tpu.matmul %94, %95, %cst_68 {dimension_numbers = #tpu.dot_dimension_numbers<[1], [1], [0], [0], [0, 0, 1, 0], [], []>} : vector<8x8xbf16>, vector<8x8xbf16>, vector<8x8xf32> -> vector<8x8xf32>
    %97 = arith.truncf %96 : vector<8x8xf32> to vector<8x8xbf16>
    %98 = vector.extract_strided_slice %77 {offsets = [0, 16], sizes = [8, 8], strides = [1, 1]} : vector<8x32xbf16> to vector<8x8xbf16>
    %cst_69 = arith.constant dense<0.000000e+00> : vector<8x8xf32>
    %99 = tpu.matmul %97, %98, %cst_69 {dimension_numbers = #tpu.dot_dimension_numbers<[1], [0], [0], [1], [0, 0, 1, 1], [], []>} : vector<8x8xbf16>, vector<8x8xbf16>, vector<8x8xf32> -> vector<8x8xf32>
    %cst_70 = arith.constant 1.250000e-01 : f32
    %100 = vector.broadcast %cst_70 : f32 to vector<8x8xf32>
    %101 = arith.mulf %99, %100 : vector<8x8xf32>
    %102 = vector.extract_strided_slice %75 {offsets = [0, 24], sizes = [8, 8], strides = [1, 1]} : vector<8x32xbf16> to vector<8x8xbf16>
    %103 = vector.extract_strided_slice %76 {offsets = [0, 24], sizes = [8, 8], strides = [1, 1]} : vector<8x32xbf16> to vector<8x8xbf16>
    %cst_71 = arith.constant dense<0.000000e+00> : vector<8x8xf32>
    %104 = tpu.matmul %102, %103, %cst_71 {dimension_numbers = #tpu.dot_dimension_numbers<[1], [1], [0], [0], [0, 0, 1, 0], [], []>} : vector<8x8xbf16>, vector<8x8xbf16>, vector<8x8xf32> -> vector<8x8xf32>
    %105 = arith.truncf %104 : vector<8x8xf32> to vector<8x8xbf16>
    %106 = vector.extract_strided_slice %77 {offsets = [0, 24], sizes = [8, 8], strides = [1, 1]} : vector<8x32xbf16> to vector<8x8xbf16>
    %cst_72 = arith.constant dense<0.000000e+00> : vector<8x8xf32>
    %107 = tpu.matmul %105, %106, %cst_72 {dimension_numbers = #tpu.dot_dimension_numbers<[1], [0], [0], [1], [0, 0, 1, 1], [], []>} : vector<8x8xbf16>, vector<8x8xbf16>, vector<8x8xf32> -> vector<8x8xf32>
    %cst_73 = arith.constant 1.250000e-01 : f32
    %108 = vector.broadcast %cst_73 : f32 to vector<8x8xf32>
    %109 = arith.mulf %107, %108 : vector<8x8xf32>
    %110 = tpu.concatenate %85, %93, %101, %109 in 1 : vector<8x8xf32>, vector<8x8xf32>, vector<8x8xf32>, vector<8x8xf32> -> vector<8x32xf32>
    %c0_74 = arith.constant 0 : index
    %c0_75 = arith.constant 0 : index
    %111 = vector.load %arg19[%c0_74, %c0_75] : memref<8x32xf32, #tpu.memory_space<vmem>>, vector<8x32xf32>
    %112 = arith.subf %110, %111 : vector<8x32xf32>
    %cst_76 = arith.constant 5.000000e-01 : f32
    %113 = vector.broadcast %cst_76 : f32 to vector<8x32xf32>
    %114 = arith.mulf %112, %113 : vector<8x32xf32>
    %115 = arith.addf %111, %114 : vector<8x32xf32>
    %cst_77 = arith.constant 5.000000e-01 : f32
    %116 = vector.broadcast %cst_77 : f32 to vector<8x32xf32>
    %117 = arith.cmpf oge, %115, %116 : vector<8x32xf32>
    %cst_78 = arith.constant 0.000000e+00 : f32
    %118 = vector.broadcast %cst_78 : f32 to vector<8x32xf32>
    %119 = arith.select %117, %118, %115 : vector<8x32xi1>, vector<8x32xf32>
    %c0_79 = arith.constant 0 : index
    %c0_80 = arith.constant 0 : index
    %120 = vector.load %arg19[%c0_79, %c0_80] : memref<8x32xf32, #tpu.memory_space<vmem>>, vector<8x32xf32>
    tpu.vector_store %arg19[%c0_79, %c0_80], %119 {strides = array<i32>} : memref<8x32xf32, #tpu.memory_space<vmem>>, vector<8x32xf32>,
    %cst_81 = arith.constant 1.000000e+00 : f32
    %cst_82 = arith.constant 0.000000e+00 : f32
    %121 = vector.broadcast %cst_81 : f32 to vector<8x32xf32>
    %122 = vector.broadcast %cst_82 : f32 to vector<8x32xf32>
    %123 = arith.select %117, %121, %122 : vector<8x32xi1>, vector<8x32xf32>
    %124 = arith.truncf %123 : vector<8x32xf32> to vector<8x32xbf16>
    %c0_83 = arith.constant 0 : index
    %c0_84 = arith.constant 0 : index
    %125 = vector.load %arg24[%c0_83, %c0_84] : memref<8x32xbf16, #tpu.memory_space<vmem>>, vector<8x32xbf16>
    tpu.vector_store %arg24[%c0_83, %c0_84], %124 {strides = array<i32>} : memref<8x32xbf16, #tpu.memory_space<vmem>>, vector<8x32xbf16>,
    %c0_85 = arith.constant 0 : index
    %c0_86 = arith.constant 0 : index
    %126 = vector.load %arg24[%c0_85, %c0_86] : memref<8x32xbf16, #tpu.memory_space<vmem>>, vector<8x32xbf16>
    %c0_87 = arith.constant 0 : index
    %c0_88 = arith.constant 0 : index
    %127 = vector.load %arg12[%c0_87, %c0_88] : memref<32x32xbf16, #tpu.memory_space<vmem>>, vector<32x32xbf16>
    %cst_89 = arith.constant dense<0.000000e+00> : vector<8x32xf32>
    %128 = tpu.matmul %126, %127, %cst_89 {dimension_numbers = #tpu.dot_dimension_numbers<[1], [0], [0], [1], [0, 0, 1, 1], [], []>} : vector<8x32xbf16>, vector<32x32xbf16>, vector<8x32xf32> -> vector<8x32xf32>
    %c0_90 = arith.constant 0 : index
    %c0_91 = arith.constant 0 : index
    %129 = vector.load %arg13[%c0_90, %c0_91] : memref<1x32xf32, #tpu.memory_space<vmem>>, vector<1x32xf32>
    %130 = vector.broadcast %129 : vector<1x32xf32> to vector<8x32xf32>
    %131 = arith.mulf %128, %130 : vector<8x32xf32>
    %c0_92 = arith.constant 0 : index
    %c0_93 = arith.constant 0 : index
    %132 = vector.load %arg14[%c0_92, %c0_93] : memref<1x32xf32, #tpu.memory_space<vmem>>, vector<1x32xf32>
    %133 = vector.broadcast %132 : vector<1x32xf32> to vector<8x32xf32>
    %134 = arith.addf %131, %133 : vector<8x32xf32>
    %c0_94 = arith.constant 0 : index
    %c0_95 = arith.constant 0 : index
    %135 = vector.load %arg20[%c0_94, %c0_95] : memref<8x32xf32, #tpu.memory_space<vmem>>, vector<8x32xf32>
    %136 = arith.subf %134, %135 : vector<8x32xf32>
    %cst_96 = arith.constant 5.000000e-01 : f32
    %137 = vector.broadcast %cst_96 : f32 to vector<8x32xf32>
    %138 = arith.mulf %136, %137 : vector<8x32xf32>
    %139 = arith.addf %135, %138 : vector<8x32xf32>
    %cst_97 = arith.constant 1.000000e+00 : f32
    %140 = vector.broadcast %cst_97 : f32 to vector<8x32xf32>
    %141 = arith.cmpf oge, %139, %140 : vector<8x32xf32>
    %cst_98 = arith.constant 0.000000e+00 : f32
    %142 = vector.broadcast %cst_98 : f32 to vector<8x32xf32>
    %143 = arith.select %141, %142, %139 : vector<8x32xi1>, vector<8x32xf32>
    %c0_99 = arith.constant 0 : index
    %c0_100 = arith.constant 0 : index
    %144 = vector.load %arg20[%c0_99, %c0_100] : memref<8x32xf32, #tpu.memory_space<vmem>>, vector<8x32xf32>
    tpu.vector_store %arg20[%c0_99, %c0_100], %143 {strides = array<i32>} : memref<8x32xf32, #tpu.memory_space<vmem>>, vector<8x32xf32>,
    %cst_101 = arith.constant 1.000000e+00 : f32
    %cst_102 = arith.constant 0.000000e+00 : f32
    %145 = vector.broadcast %cst_101 : f32 to vector<8x32xf32>
    %146 = vector.broadcast %cst_102 : f32 to vector<8x32xf32>
    %147 = arith.select %141, %145, %146 : vector<8x32xi1>, vector<8x32xf32>
    %148 = arith.addf %147, %4 : vector<8x32xf32>
    %c0_103 = arith.constant 0 : index
    %c0_104 = arith.constant 0 : index
    %c0_105 = arith.constant 0 : index
    %149 = vector.load %arg15[%c0_103, %c0_104, %c0_105] : memref<1x8x32xf32, #tpu.memory_space<vmem>>, vector<1x8x32xf32>
    %150 = vector.shape_cast %149 : vector<1x8x32xf32> to vector<8x32xf32>
    %151 = vector.shape_cast %148 : vector<8x32xf32> to vector<1x8x32xf32>
    tpu.vector_store %arg15[%c0_103, %c0_104, %c0_105], %151 {strides = array<i32>} : memref<1x8x32xf32, #tpu.memory_space<vmem>>, vector<1x8x32xf32>,
    return
  }
  func.func @transform_0(%arg0: i32, %arg1: i32) -> (i32, i32, i32) {
    %c0_i32 = arith.constant 0 : i32
    %c0_i32_0 = arith.constant 0 : i32
    return %arg1, %arg0, %c0_i32 : i32, i32, i32
  }
  func.func @transform_1(%arg0: i32, %arg1: i32) -> (i32, i32) {
    %c0_i32 = arith.constant 0 : i32
    %c0_i32_0 = arith.constant 0 : i32
    %c0_i32_1 = arith.constant 0 : i32
    return %c0_i32, %c0_i32_0 : i32, i32
  }
  func.func @transform_2(%arg0: i32, %arg1: i32) -> (i32, i32) {
    %c0_i32 = arith.constant 0 : i32
    %c0_i32_0 = arith.constant 0 : i32
    %c0_i32_1 = arith.constant 0 : i32
    return %c0_i32, %c0_i32_0 : i32, i32
  }
  func.func @transform_3(%arg0: i32, %arg1: i32) -> (i32, i32) {
    %c0_i32 = arith.constant 0 : i32
    %c0_i32_0 = arith.constant 0 : i32
    %c0_i32_1 = arith.constant 0 : i32
    return %c0_i32, %c0_i32_0 : i32, i32
  }
  func.func @transform_4(%arg0: i32, %arg1: i32) -> (i32, i32) {
    %c0_i32 = arith.constant 0 : i32
    %c0_i32_0 = arith.constant 0 : i32
    %c0_i32_1 = arith.constant 0 : i32
    return %c0_i32, %c0_i32_0 : i32, i32
  }
  func.func @transform_5(%arg0: i32, %arg1: i32) -> (i32, i32) {
    %c0_i32 = arith.constant 0 : i32
    %c0_i32_0 = arith.constant 0 : i32
    %c0_i32_1 = arith.constant 0 : i32
    return %c0_i32, %c0_i32_0 : i32, i32
  }
  func.func @transform_6(%arg0: i32, %arg1: i32) -> (i32, i32) {
    %c0_i32 = arith.constant 0 : i32
    %c0_i32_0 = arith.constant 0 : i32
    %c0_i32_1 = arith.constant 0 : i32
    return %c0_i32, %c0_i32_0 : i32, i32
  }
  func.func @transform_7(%arg0: i32, %arg1: i32) -> (i32, i32) {
    %c0_i32 = arith.constant 0 : i32
    %c0_i32_0 = arith.constant 0 : i32
    %c0_i32_1 = arith.constant 0 : i32
    return %c0_i32, %c0_i32_0 : i32, i32
  }
  func.func @transform_8(%arg0: i32, %arg1: i32) -> (i32, i32) {
    %c0_i32 = arith.constant 0 : i32
    %c0_i32_0 = arith.constant 0 : i32
    %c0_i32_1 = arith.constant 0 : i32
    return %c0_i32, %c0_i32_0 : i32, i32
  }
  func.func @transform_9(%arg0: i32, %arg1: i32) -> (i32, i32) {
    %c0_i32 = arith.constant 0 : i32
    %c0_i32_0 = arith.constant 0 : i32
    %c0_i32_1 = arith.constant 0 : i32
    return %c0_i32, %c0_i32_0 : i32, i32
  }
  func.func @transform_10(%arg0: i32, %arg1: i32) -> (i32, i32) {
    %c0_i32 = arith.constant 0 : i32
    %c0_i32_0 = arith.constant 0 : i32
    %c0_i32_1 = arith.constant 0 : i32
    return %c0_i32, %c0_i32_0 : i32, i32
  }
  func.func @transform_11(%arg0: i32, %arg1: i32) -> (i32, i32) {
    %c0_i32 = arith.constant 0 : i32
    %c0_i32_0 = arith.constant 0 : i32
    %c0_i32_1 = arith.constant 0 : i32
    return %c0_i32, %c0_i32_0 : i32, i32
  }
  func.func @transform_12(%arg0: i32, %arg1: i32) -> (i32, i32) {
    %c0_i32 = arith.constant 0 : i32
    %c0_i32_0 = arith.constant 0 : i32
    %c0_i32_1 = arith.constant 0 : i32
    return %c0_i32, %c0_i32_0 : i32, i32
  }
  func.func @transform_13(%arg0: i32, %arg1: i32) -> (i32, i32, i32) {
    %c0_i32 = arith.constant 0 : i32
    %c0_i32_0 = arith.constant 0 : i32
    return %arg1, %arg0, %c0_i32 : i32, i32, i32
  }
}

</mosaic_0001>

<bundles_post_ra>
// kernel: tpu_custom_call.1
= control target key start
LH: loop header
LB: loop body
LE: loop exit
PB: predicated region body
PF: predicated region fallthrough
CT: control target
= control target key end

     0   :  { %s2706_s0 = inlined_call_operand.hbm [shape: f32[4,16,32], index: 0, kind: input, shape index: {}]   ;;  %s2707_s1 = inlined_call_operand.hbm [shape: bf16[32,32], index: 1, kind: input, shape index: {}]   ;;  %s2708_s2 = inlined_call_operand.vmem [shape: f32[1,32], index: 2, kind: input, shape index: {}]   ;;  %s2709_s3 = inlined_call_operand.vmem [shape: f32[1,32], index: 3, kind: input, shape index: {}]   ;;  %s2710_s4 = inlined_call_operand.hbm [shape: bf16[32,32], index: 4, kind: input, shape index: {}]   ;;  %s2711_s5 = inlined_call_operand.hbm [shape: f32[1,32], index: 5, kind: input, shape index: {}]   ;;  %s2712_s6 = inlined_call_operand.hbm [shape: f32[1,32], index: 6, kind: input, shape index: {}]   ;;  %s2713_s7 = inlined_call_operand.vmem [shape: bf16[32,32], index: 7, kind: input, shape index: {}]   ;;  %s2714_s8 = inlined_call_operand.hbm [shape: f32[1,32], index: 8, kind: input, shape index: {}]   ;;  %s2715_s9 = inlined_call_operand.hbm [shape: f32[1,32], index: 9, kind: input, shape index: {}]   ;;  %s2716_s10 = inlined_call_operand.vmem [shape: bf16[32,32], index: 10, kind: input, shape index: {}]   ;;  %s2717_s11 = inlined_call_operand.vmem [shape: f32[1,32], index: 11, kind: input, shape index: {}]   ;;  %s2718_s12 = inlined_call_operand.vmem [shape: f32[1,32], index: 12, kind: input, shape index: {}]   ;;  %s2719_s13 = inlined_call_operand.hbm [shape: f32[4,16,32], index: 13, kind: output, shape index: {}]  }
   0x1   :  { %2729 = sst [smem:[#allocation31_spill]] %s2707_s1 }
   0x2   :  { %2730 = sst [smem:[#allocation32_spill]] %s2708_s2 }
   0x3   :  { %2731 = sst [smem:[#allocation33_spill]] %s2709_s3 }
   0x4   :  { %2732 = sst [smem:[#allocation34_spill]] %s2710_s4 }
   0x5   :  { %2733 = sst [smem:[#allocation35_spill]] %s2711_s5 }
   0x6   :  { %2734 = sst [smem:[#allocation36_spill]] %s2713_s7 }
   0x7   :  { %2735 = sst [smem:[#allocation37_spill]] %s2716_s10 }
   0x8   :  { %2736 = sst [smem:[#allocation38_spill]] %s2717_s11 }
   0x9   :  { %2737 = sst [smem:[#allocation39_spill]] %s2718_s12 }
   0xa   :  { %2738 = sst [smem:[#allocation40_spill]] %s2719_s13 }
   0xb   :  { %18 = vsyncpa [#allocation12], 0 }
   0xc   :  { %20 = vsyncpa [#allocation12 + $0x1], 0 }
   0xd   :  { %21 = vsyncpa [#allocation15], 0 }
   0xe   :  { %22 = vsyncpa [#allocation18], 0 }
   0xf   :  { %23 = vsyncpa [#allocation21], 0 }
  0x10   :  { %24 = vsyncpa [#allocation13], 0 }
  0x11   :  { %26 = vsyncpa [#allocation13 + $0x1], 0  ;;  %s2223_s25 = smov 0   ;;  %s2225_s26 = smov 0  }
  0x12   :  { %s2227_s27 = smov 0   ;;  %s2229_s28 = smov 0  }
  0x13   :  { %s2231_s29 = smov 0   ;;  %s2233_s30 = smov 0  }
  0x14   :  { %s2235_s14 = smov 0   ;;  %s2237_s15 = smov 0  }
  0x15 LB: > { %2739 = sst [smem:[#allocation29_spill]] %s2116_s28  ;;  %s2720_s16 = sadd.s32 4294967295, %s2132_s15   ;;  %s2132_s15 = sphi %s2237_s15, %s32_s15   ;;  %s2128_s14 = sphi %s2235_s14, %s2777_s14   ;;  %s2124_s30 = sphi %s2233_s30, %s2776_s30   ;;  %s2120_s29 = sphi %s2231_s29, %s2775_s29   ;;  %s2116_s28 = sphi %s2229_s28, %s2774_s28   ;;  %s2112_s27 = sphi %s2227_s27, %s2773_s27   ;;  %s2108_s26 = sphi %s2225_s26, %s2772_s26   ;;  %s2104_s25 = sphi %s2223_s25, %s2771_s25  }
  0x16   : > { %2740 = sst [smem:[#allocation30_spill]] %s2120_s29  ;;  %p1498_p0 = scmp.ge.s32.totalorder %s2132_s15, 1 }
  0x17   : > { %p2267_p1 = scmp.eq.s32.totalorder %s2720_s16, 0  ;;  %p357_p2 = scmp.lt.s32.totalorder %s2132_s15, 9 }
  0x18   : > { %s2134_s19 = smov [#allocation14]   ;;  %s2135_s22 = smov [#allocation17]  }
  0x19   : > { %s2741_s17 = scalar_select %p2267_p1, 1, 0 }
  0x1a   : > { %p2272_p3 = pnand %p1498_p0, %p357_p2  ;;  %s369_s20 = sshll.u32 %s2134_s19, 4  ;;  %s2276_s20 = int_to_ptr.vmem [resolvable:$true] %s369_s20 }
  0x1b   : > { %s402_s23 = sshll.u32 %s2135_s22, 4  ;;  %s2136_s24 = smov [#allocation20]   ;;  %s2286_s23 = int_to_ptr.vmem [resolvable:$true] %s402_s23 }
  0x1c   : > { %s2742_s18 = scalar_select %p2272_p3, 1, 0 }
  0x1d   : > { %p1691_p4 = pneg %p2272_p3  ;;  %s2288_s16 = sshll.u32 %s2136_s24, 4  ;;  %s428_s16 = int_to_ptr.vmem [resolvable:$true] %s2288_s16 }
  0x1e   : > { %s2744_s1 = sld [smem:[#allocation31_spill]] }
  0x1f   : > { %p2282_p5 = pnand %p1691_p4, %p2267_p1 }
  0x21   : > { %p2298_p7 = pneg %p2282_p5 }
  0x24   : > { %s1824_s19 = scalar_lea.hbm %s2744_s1, 256 }
  0x25   : > { %p1825_p6 = scmp.ne.s32.totalorder %s2744_s1, %s1824_s19  ;;  %p1831_p10 = scmp.lt.u32.totalorder %s1824_s19, %s2744_s1 }
  0x27   : > { %p1827_p8 = pnand %p2298_p7, %p1825_p6 }
  0x29   : > { %p1828_p9 = pneg %p1827_p8 }
  0x2b   : > { %p1833_p11 = pnand %p1831_p10, %p1828_p9 }
  0x2d   : > { %1836 = shalt.err (!%p1833_p11)
}
  0x2e   : > { %s1837_s11 = scalar_lea.vmem %s2276_s20, 256  ;;  %p1845_p2 = scmp.lt.s32.totalorder %s2276_s20, %s2276_s20 }
  0x2f   : > { %p1838_p12 = scmp.ne.s32.totalorder %s2276_s20, %s1837_s11  ;;  %p1846_p4 = scmp.lt.s32.totalorder %s1837_s11, %s1837_s11 }
  0x31   : > { %p1840_p13 = pnand %p1838_p12, %p2298_p7  ;;  %p1847_p6 = por %p1846_p4, %p1845_p2 }
  0x33   : > { %p1841_p0 = pneg %p1840_p13 }
  0x35   : > { %p1848_p8 = pnand %p1847_p6, %p1841_p0 }
  0x37   : > { %1851 = shalt.err (!%p1848_p8)
}
  0x38   : > { %s2727_s12 = smov 64   ;;  %s2138_s13 = smov 4  }
  0x39   : > { %1694 = dma.hbm_to_vmem [thread:$0]  (!%p2282_p5), %s2744_s1, 256, %s2276_s20, [#allocation15], %s2727_s12, %s2727_s12, %s2138_s13  }
  0x3a   : > { %s2746_s5 = sld [smem:[#allocation35_spill]] }
  0x40   : > { %s1852_s11 = scalar_lea.hbm %s2746_s5, 16 }
  0x41   : > { %p1853_p9 = scmp.ne.s32.totalorder %s2746_s5, %s1852_s11  ;;  %p1859_p12 = scmp.lt.u32.totalorder %s1852_s11, %s2746_s5 }
  0x43   : > { %p1855_p10 = pnand %p1853_p9, %p2298_p7 }
  0x45   : > { %p1856_p11 = pneg %p1855_p10 }
  0x47   : > { %p1861_p13 = pnand %p1859_p12, %p1856_p11 }
  0x49   : > { %1864 = shalt.err (!%p1861_p13)
}
  0x4a   : > { %s1865_s20 = scalar_lea.vmem %s2286_s23, 16  ;;  %s1872_s2 = scalar_lea.vmem %s2286_s23, 32 }
  0x4b   : > { %p1866_p0 = scmp.ne.s32.totalorder %s2286_s23, %s1865_s20  ;;  %p1873_p6 = scmp.lt.s32.totalorder %s2286_s23, %s2286_s23 }
  0x4c   : > { %p1874_p8 = scmp.lt.s32.totalorder %s1872_s2, %s1865_s20 }
  0x4d   : > { %p1868_p2 = pnand %p1866_p0, %p2298_p7 }
  0x4e   : > { %p1875_p9 = por %p1874_p8, %p1873_p6 }
  0x4f   : > { %p1869_p4 = pneg %p1868_p2 }
  0x51   : > { %p1876_p10 = pnand %p1875_p9, %p1869_p4 }
  0x53   : > { %1879 = shalt.err (!%p1876_p10)
}
  0x54   : > { %1700 = dma.hbm_to_vmem [thread:$0]  (!%p2282_p5), %s2746_s5, 16, %s2286_s23, [#allocation18]  }
  0x55   : > { %s1880_s19 = scalar_lea.hbm %s2714_s8, 16 }
  0x56   : > { %p1881_p11 = scmp.ne.s32.totalorder %s2714_s8, %s1880_s19  ;;  %p1887_p0 = scmp.lt.u32.totalorder %s1880_s19, %s2714_s8 }
  0x58   : > { %p1883_p12 = pnand %p1881_p11, %p2298_p7 }
  0x5a   : > { %p1884_p13 = pneg %p1883_p12 }
  0x5c   : > { %p1889_p2 = pnand %p1887_p0, %p1884_p13 }
  0x5e   : > { %1892 = shalt.err (!%p1889_p2)
}
  0x5f   : > { %s1893_s2 = scalar_lea.vmem %s428_s16, 16  ;;  %s1900_s23 = scalar_lea.vmem %s428_s16, 32 }
  0x60   : > { %p1894_p4 = scmp.ne.s32.totalorder %s428_s16, %s1893_s2  ;;  %p1901_p9 = scmp.lt.s32.totalorder %s428_s16, %s428_s16 }
  0x61   : > { %p1902_p10 = scmp.lt.s32.totalorder %s1900_s23, %s1893_s2 }
  0x62   : > { %p1896_p6 = pnand %p1894_p4, %p2298_p7 }
  0x63   : > { %p1903_p3 = por %p1902_p10, %p1901_p9 }
  0x64   : > { %p1897_p8 = pneg %p1896_p6 }
  0x66   : > { %p1904_p1 = pnand %p1903_p3, %p1897_p8 }
  0x68   : > { %1907 = shalt.err (!%p1904_p1)
}
  0x69   : > { %1706 = dma.hbm_to_vmem [thread:$0]  (!%p2282_p5), %s2714_s8, 16, %s428_s16, [#allocation21]  }
  0x6a   : > { %s2139_s28 = smov [#allocation16]   ;;  %s2140_s19 = smov [#allocation19]  }
  0x6b   : > { %s388_s29 = sshll.u32 %s2139_s28, 4  ;;  %s413_s22 = sshll.u32 %s2140_s19, 4  ;;  %s389_s29 = int_to_ptr.vmem [resolvable:$true] %s388_s29  ;;  %s414_s22 = int_to_ptr.vmem [resolvable:$true] %s413_s22 }
  0x6c   : > { %s2747_s4 = sld [smem:[#allocation34_spill]] }
  0x72   : > { %s1908_s20 = scalar_lea.hbm %s2747_s4, 256 }
  0x73   : > { %p1909_p1 = scmp.ne.s32.totalorder %s2747_s4, %s1908_s20  ;;  %p1915_p12 = scmp.lt.u32.totalorder %s1908_s20, %s2747_s4 }
  0x75   : > { %p1911_p3 = pnand %p1909_p1, %p2298_p7 }
  0x77   : > { %p1912_p11 = pneg %p1911_p3 }
  0x79   : > { %p1917_p13 = pnand %p1915_p12, %p1912_p11 }
  0x7b   : > { %1920 = shalt.err (!%p1917_p13)
}
  0x7c   : > { %s1921_s16 = scalar_lea.vmem %s389_s29, 256  ;;  %p1929_p6 = scmp.lt.s32.totalorder %s389_s29, %s389_s29 }
  0x7d   : > { %p1922_p0 = scmp.ne.s32.totalorder %s389_s29, %s1921_s16  ;;  %p1930_p8 = scmp.lt.s32.totalorder %s1921_s16, %s1921_s16 }
  0x7f   : > { %p1924_p2 = pnand %p1922_p0, %p2298_p7  ;;  %p1931_p9 = por %p1930_p8, %p1929_p6 }
  0x81   : > { %p1925_p4 = pneg %p1924_p2 }
  0x83   : > { %p1932_p10 = pnand %p1931_p9, %p1925_p4 }
  0x85   : > { %1935 = shalt.err (!%p1932_p10)
}
  0x86   : > { %s2748_s7 = smov 64   ;;  %s1936_s11 = scalar_lea.hbm %s2712_s6, 16 }
  0x87   : > { %1697 = dma.hbm_to_vmem [thread:$0]  (!%p2282_p5), %s2747_s4, 256, %s389_s29, [#allocation15], %s2748_s7, %s2748_s7, %s2138_s13  }
  0x88   : > { %p1937_p1 = scmp.ne.s32.totalorder %s2712_s6, %s1936_s11  ;;  %p1943_p12 = scmp.lt.u32.totalorder %s1936_s11, %s2712_s6 }
  0x8a   : > { %p1939_p3 = pnand %p1937_p1, %p2298_p7 }
  0x8c   : > { %p1940_p11 = pneg %p1939_p3 }
  0x8e   : > { %p1945_p13 = pnand %p1943_p12, %p1940_p11 }
  0x90   : > { %1948 = shalt.err (!%p1945_p13)
}
  0x91   : > { %s1949_s16 = scalar_lea.vmem %s414_s22, 16  ;;  %s1956_s13 = scalar_lea.vmem %s414_s22, 32 }
  0x92   : > { %p1950_p0 = scmp.ne.s32.totalorder %s414_s22, %s1949_s16  ;;  %p1957_p6 = scmp.lt.s32.totalorder %s414_s22, %s414_s22 }
  0x93   : > { %p1958_p8 = scmp.lt.s32.totalorder %s1956_s13, %s1949_s16 }
  0x94   : > { %p1952_p2 = pnand %p1950_p0, %p2298_p7 }
  0x95   : > { %p1959_p9 = por %p1958_p8, %p1957_p6 }
  0x96   : > { %p1953_p4 = pneg %p1952_p2 }
  0x98   : > { %p1960_p10 = pnand %p1959_p9, %p1953_p4 }
  0x9a   : > { %1963 = shalt.err (!%p1960_p10)
}
  0x9b   : > { %1703 = dma.hbm_to_vmem [thread:$0]  (!%p2282_p5), %s2712_s6, 16, %s414_s22, [#allocation18]  }
  0x9c   : > { %s2141_s12 = smov [#allocation22]   ;;  %s1964_s11 = scalar_lea.hbm %s2715_s9, 16 }
  0x9d   : > { %s438_s28 = sshll.u32 %s2141_s12, 4  ;;  %p1965_p1 = scmp.ne.s32.totalorder %s2715_s9, %s1964_s11  ;;  %s439_s28 = int_to_ptr.vmem [resolvable:$true] %s438_s28 }
  0x9e   : > { %p1971_p12 = scmp.lt.u32.totalorder %s1964_s11, %s2715_s9 }
  0x9f   : > { %p1967_p3 = pnand %p1965_p1, %p2298_p7 }
  0xa1   : > { %p1968_p11 = pneg %p1967_p3 }
  0xa3   : > { %p1973_p13 = pnand %p1971_p12, %p1968_p11 }
  0xa5   : > { %1976 = shalt.err (!%p1973_p13)
}
  0xa6   : > { %s1977_s22 = scalar_lea.vmem %s439_s28, 16  ;;  %s1984_s16 = scalar_lea.vmem %s439_s28, 32 }
  0xa7   : > { %p1978_p0 = scmp.ne.s32.totalorder %s439_s28, %s1977_s22  ;;  %p1985_p6 = scmp.lt.s32.totalorder %s439_s28, %s439_s28 }
  0xa8   : > { %p1986_p8 = scmp.lt.s32.totalorder %s1984_s16, %s1977_s22 }
  0xa9   : > { %p1980_p2 = pnand %p1978_p0, %p2298_p7 }
  0xaa   : > { %p1987_p9 = por %p1986_p8, %p1985_p6 }
  0xab   : > { %p1981_p4 = pneg %p1980_p2 }
  0xad   : > { %p1988_p10 = pnand %p1987_p9, %p1981_p4 }
  0xaf   : > { %1991 = shalt.err (!%p1988_p10)
}
  0xb0   : > { %1709 = dma.hbm_to_vmem [thread:$0]  (!%p2282_p5), %s2715_s9, 16, %s439_s28, [#allocation21]  }
  0xb1   : > { %s41_s10 = sadd.s32 1, %s2124_s30  ;;  %s44_s21 = sadd.s32 1, %s2128_s14 }
  0xb2   : > { %p42_p7 = scmp.ge.s32.totalorder %s41_s10, 4  ;;  %s1497_s7 = sadd.s32 4294967294, %s2132_s15  }
  0xb3   : > { %s53_s12 = sadd.s32 1, %s2112_s27  ;;  %p60_p1 = scmp.ne.s32.totalorder %s2112_s27, %s2108_s26 }
  0xb4   : > { %s2779_s10 = smov (%p42_p7, %s41_s10), 0  ;;  %s2781_s21 = smov (!%p42_p7, %s44_s21), %s2128_s14 }
  0xb5   : > { %s48_s19 = ssub.s32 %s2124_s30, %s2779_s10  ;;  %p46_p3 = scmp.ge.s32.totalorder %s2781_s21, 2 }
  0xb6   : > { %p66_p11 = scmp.ne.s32.totalorder %s2108_s26, %s2104_s25  ;;  %p61_p12 = scmp.eq.s32.totalorder %s2132_s15, 0 }
  0xb7   : > { %s2749_s28 = sadd.s32 4294967295, %s2132_s15   ;;  %s2783_s21 = smov (%p46_p3, %s2781_s21), 0 }
  0xb8   : > { %p344_p5 = scmp.eq.s32.totalorder %s2749_s28, 7  ;;  %p2750_p13 = scmp.ne.s32.totalorder %s2741_s17, 0 }
  0xb9   : > { %s49_s20 = ssub.s32 %s2128_s14, %s2783_s21  ;;  %p350_p4 = scmp.eq.s32.totalorder %s1497_s7, 7 }
  0xba   : > { %p2442_p0 = por %p2750_p13, %p66_p11  ;;  %p2446_p2 = por %p344_p5, %p60_p1 }
  0xbb   : > { %s50_s2 = sor.u32 %s49_s20, %s48_s19  ;;  %p2452_p6 = por %p61_p12, %p60_p1 }
  0xbc   : > { %s2752_s11 = scalar_select %p2446_p2, 1, 0 }
  0xbd   : > { %p51_p8 = scmp.eq.s32.totalorder %s50_s2, 0  ;;  %p2456_p9 = por %p350_p4, %p66_p11 }
  0xbe   : > { %s458_s22 = sand.u32 1, %s2112_s27   ;;  %s1507_s16 = sshll.u32 %s2124_s30, 1 }
  0xbf   : > { %s2754_s3 = scalar_select %p2456_p9, 1, 0 }
  0xc0   : > { %s2463_s13 = scalar_select %p51_p8, %s2112_s27, %s53_s12  }
  0xc1   : > { %p1724_p10 = scmp.lt.s32.totalorder %s2132_s15, 8  ;;  %s1506_s29 = sshll.u32 %s458_s22, 3 }
  0xc2   : > { %s467_s28 = sadd.s32 %s2128_s14, %s1507_s16  ;;  %s462_s7 = scalar_lea.vmem [#allocation11], %s1506_s29 }
  0xc3   : > { %s1508_s1 = sshll.u32 %s467_s28, 7  ;;  %s471_s19 = sshll.u32 %s462_s7, 4  ;;  %s2472_s19 = int_to_ptr.vmem [resolvable:$true] %s471_s19 }
  0xc4   : > { %s2470_s5 = scalar_lea.hbm %s2706_s0, %s1508_s1  ;;  %p2476_p7 = pnand %p1724_p10, %p2452_p6 }
  0xc5   : > { %s459_s2 = scalar_lea.sflag [#allocation12], %s458_s22  ;;  %s1992_s16 = scalar_lea.hbm %s2470_s5, 128 }
  0xc6   : > { %p1993_p1 = scmp.ne.s32.totalorder %s2470_s5, %s1992_s16  ;;  %p1994_p3 = pneg %p2476_p7 }
  0xc7   : > { %s1997_s29 = scalar_lea.hbm %s2706_s0, 1024  ;;  %p1998_p5 = scmp.lt.u32.totalorder %s2470_s5, %s2706_s0 }
  0xc8   : > { %p1995_p11 = pnand %p1994_p3, %p1993_p1  ;;  %p1999_p13 = scmp.lt.u32.totalorder %s1997_s29, %s1992_s16 }
  0xc9   : > { %p2001_p6 = scmp.lt.u32.totalorder %s1992_s16, %s2470_s5 }
  0xca   : > { %p1996_p12 = pneg %p1995_p11  ;;  %p2000_p4 = por %p1999_p13, %p1998_p5 }
  0xcc   : > { %p2002_p8 = por %p2001_p6, %p2000_p4 }
  0xce   : > { %p2003_p10 = pnand %p2002_p8, %p1996_p12 }
  0xd0   : > { %2006 = shalt.err (!%p2003_p10)
}
  0xd1   : > { %s2007_s22 = scalar_lea.vmem %s2472_s19, 128  ;;  %s2142_s7 = smov [#allocation11]  }
  0xd2   : > { %p2008_p1 = scmp.ne.s32.totalorder %s2472_s19, %s2007_s22  ;;  %s2012_s20 = sshll.u32 %s2142_s7, 4  ;;  %s2013_s20 = int_to_ptr.vmem [resolvable:$false] %s2012_s20 }
  0xd3   : > { %s2014_s1 = scalar_lea.vmem %s2013_s20, 256  ;;  %p2015_p2 = scmp.lt.s32.totalorder %s2472_s19, %s2013_s20 }
  0xd4   : > { %p2010_p11 = pnand %p2008_p1, %p1994_p3  ;;  %p2016_p5 = scmp.lt.s32.totalorder %s2014_s1, %s2007_s22 }
  0xd6   : > { %p2011_p9 = pneg %p2010_p11  ;;  %p2017_p13 = por %p2016_p5, %p2015_p2 }
  0xd8   : > { %p2018_p4 = pnand %p2017_p13, %p2011_p9 }
  0xda   : > { %2021 = shalt.err (!%p2018_p4)
}
  0xdb   : > { %1713 = dma.hbm_to_vmem [thread:$0]  (!%p2476_p7), %s2470_s5, 128, %s2472_s19, %s459_s2  }
  0xdc   : > { %p2756_p12 = scmp.ne.s32.totalorder %s2742_s18, 0 }
  0xdd   : > { %s2508_s16 = sand.u32 (!%p2756_p12), 1, %s2108_s26  }
  0xde   : > { %480 = sbr.rel (%p2756_p12) target bundleno = 1438 (0x59e), region = 72  ;;  %s1510_s4 = sshll.u32 (!%p2756_p12), %s2508_s16, 3 }
  0xdf   : > { %s483_s29 = scalar_lea.sflag (!%p2756_p12), [#allocation12], %s2508_s16  ;;  %s2512_s23 = scalar_lea.vmem (!%p2756_p12), [#allocation11], %s1510_s4 }
  0xe5   : > { %2083 = dma.done.wait (%p2442_p0), %s483_s29, 128  }
  0xe6   : > { %2085 = vsyncadd (%p2442_p0), %s483_s29, 4294967168  ;;  %p2757_p2 = scmp.ne.s32.totalorder %s2741_s17, 0 }
  0xe8   : > { %2087 = dma.done.wait (%p2757_p2), [#allocation15], 512  }
  0xe9   : > { %2089 = vsyncadd (%p2757_p2), [#allocation15], 4294966784 }
  0xea   : > { %2091 = dma.done.wait (%p2757_p2), [#allocation18], 32  }
  0xeb   : > { %2093 = vsyncadd (%p2757_p2), [#allocation18], 4294967264 }
  0xec   : > { %2095 = dma.done.wait (%p2757_p2), [#allocation21], 32  }
  0xed   : > { %2097 = vsyncadd (%p2757_p2), [#allocation21], 4294967264  ;;  %s2530_s5 = scalar_lea.vmem [#allocation23], %s1510_s4  ;;  %s2758_s18 = sld [smem:[#allocation29_spill]] }
  0xf3   : > { %p1518_p0 = scmp.ne.s32.totalorder %s2758_s18, 0 }
  0xf4   : > { %vm558_vm0 = vcmask (!%p1518_p0), 261120   ;;  %v2143_v0 = vmov (!%p1518_p0), 0.0  }
  0xf5   : > { %557 = sbr.rel (%p1518_p0) target bundleno = 252 (0xfc), region = 104  ;;  %559 = vst.msk [vmem:[#allocation2] sm:$0xff] (!%p1518_p0), %vm558_vm0, %v2143_v0  ;;  %560 = vst.msk [vmem:[#allocation3] sm:$0xff] (!%p1518_p0), %vm558_vm0, %v2143_v0 }
  0xf6   : > { %561 = vst.msk [vmem:[#allocation4] sm:$0xff] (!%p1518_p0), %vm558_vm0, %v2143_v0  ;;  %562 = vst.msk [vmem:[#allocation5] sm:$0xff] (!%p1518_p0), %vm558_vm0, %v2143_v0 }
  0xf7   : > { %563 = vst.msk [vmem:[#allocation6] sm:$0xff] (!%p1518_p0), %vm558_vm0, %v2143_v0 }
  0xfc PF: > { %v1813_v1 = vld [vmem:[#allocation16] sm:$0xff]   ;;  %v2144_v2 = vmov 0.0   ;;  %v1814_v3 = vld [vmem:[#allocation14] sm:$0xff]   ;;  %v1815_v4 = vld [vmem:[#allocation16 + $0x8] sm:$0xff]   ;;  %vm2145_vm1 = vmmov 0   ;;  %vm582_vm2 = vcmask 261120  }
  0xfd   : > { %1591 = vmatprep.subr.bf16.mxu1 %v2144_v2  ;;  %1583 = vmatprep.subr.bf16.mxu0 %v2144_v2  ;;  %v2539_v5 = vld [vmem:[%s2512_s23] sm:$0xff]  ;;  %v1816_v6 = vld [vmem:[#allocation14 + $0x8] sm:$0xff]   ;;  %s2759_s19 = sld [smem:[#allocation36_spill]]  ;;  %v1527_v10 = vld [vmem:[#allocation17] ss:$0 sm:$0xff]  ;;  %s2760_s7 = sld [smem:[#allocation32_spill]] }
  0xfe   : > { %1592 = vmatpush3.bf16.msra.mxu1 %v1813_v1  ;;  %1595 = vmatprep.mubr.msk.bf16.mxu1 %vm2145_vm1, %v2144_v2  ;;  %v565_v7 = vpack.c.bf16 %v2539_v5, %v2539_v5  ;;  %v1528_v13 = vld [vmem:[#allocation19] ss:$0 sm:$0xff]  ;;  %s2761_s4 = sld [smem:[#allocation33_spill]]  ;;  %v642_v24 = vld [vmem:[#allocation2] sm:$0xff]  ;;  %vm651_vm4 = vcmask 257024   ;;  %vm820_vm6 = vcmask 64512  }
  0xff   : > { %1593 = vmatprep.subr.bf16.mxu1 %v2144_v2  ;;  %1584 = vmatpush3.bf16.msra.mxu0 %v1814_v3  ;;  %v725_v18 = vld [vmem:[#allocation3] sm:$0xff]  ;;  %s2146_s29 = smov 112   ;;  %s2147_s23 = smov 120   ;;  %v807_v50 = vld [vmem:[#allocation4] sm:$0xff]  ;;  %vm871_vm8 = vcmask 1043456   ;;  %vm1238_vm9 = vcmask 130048  }
 0x100   : > { %1585 = vmatprep.subr.bf16.mxu0 %v2144_v2  ;;  %1587 = vmatprep.mubr.msk.bf16.mxu0 %vm2145_vm1, %v2144_v2  ;;  %s2148_s18 = smov 104   ;;  %v1532_v46 = vld [vmem:[#allocation20] ss:$0 sm:$0xff]  ;;  %v1533_v47 = vld [vmem:[#allocation22] ss:$0 sm:$0xff]  ;;  %s2149_s17 = smov 8  }
 0x101   : > { %s2150_s24 = smov 16   ;;  %s2762_s28 = sld [smem:[#allocation37_spill]]  ;;  %vm1240_vm10 = vcmask 195584  }
 0x102   : > { %1594 = vmatpush3.bf16.msra.mxu1 %v1815_v4  ;;  %s2767_s2 = sld [smem:[#allocation39_spill]]  ;;  %s1354_s1 = sshll.u32 %s2530_s5, 4  ;;  %s2652_s1 = int_to_ptr.vmem [resolvable:$true] %s1354_s1 }
 0x103   : > { %1586 = vmatpush3.bf16.msra.mxu0 %v1816_v6  ;;  %v1817_v8 = vld [vmem:[%s2759_s19] sm:$0xff]   ;;  %1607 = vmatprep.subr.bf16.mxu1 %v2144_v2  ;;  %v1818_v9 = vld [vmem:[%s2759_s19 + $0x8] sm:$0xff]   ;;  %p2769_p7 = scmp.ne.s32.totalorder %s2752_s11, 0  ;;  %s2152_s12 = smov [#allocation23]  }
 0x104   : > { %1599 = vmatprep.subr.bf16.mxu0 %v2144_v2  ;;  %v1522_v11 = vld [vmem:[%s2760_s7] ss:$0 sm:$0xff]  ;;  %s2151_s7 = smov 24  }
 0x105   : > { %1596 = vmatmul.mubr.msk.bf16.vlgmr.msra.gmra.mrb[0].mxu1 %vm582_vm2, %v565_v7  ;;  %v1523_v17 = vld [vmem:[%s2761_s4] ss:$0 sm:$0xff]  ;;  %s2764_s4 = sld [smem:[#allocation29_spill]] }
 0x106   : > { %1588 = vmatmul.mubr.msk.bf16.vlgmr.msra.gmra.mrb[0].mxu0 %vm582_vm2, %v565_v7  ;;  %1609 = vmatprep.mubr.msk.bf16.mxu1 %vm2145_vm1, %v2144_v2 }
 0x107   : > { %1600 = vmatpush3.bf16.msra.mxu0 %v1817_v8  ;;  %1603 = vmatprep.mubr.msk.bf16.mxu0 %vm2145_vm1, %v2144_v2  ;;  %s2763_s22 = smov %s2762_s28 }
 0x108   : > { %1601 = vmatprep.subr.bf16.mxu0 %v2144_v2 }
 0x10b   : > { %1602 = vmatpush3.bf16.msra.mxu0 %v1818_v9 }
 0x10c   : > { %1613 = vmatprep.subr.bf16.mxu0 %v2144_v2 }
 0x10e   : > { %1604 = vmatmul.mubr.msk.bf16.vlgmr.msra.gmra.mrb[4].mxu0 %vm582_vm2, %v565_v7 }
 0x10f   : > { %1615 = vmatprep.mubr.msk.bf16.mxu0 %vm2145_vm1, %v2144_v2 }
 0x1d8   : > { %v703_v12 = vpop.f32.mrb[0].mxu1 }
 0x1d9   : > { %v716_v14 = vmul.f32 %v1527_v10, %v703_v12  ;;  %v1597_v15 = vpop.f32.mrb[1].mxu1  ;;  %v620_v16 = vpop.f32.mrb[0].mxu0 }
 0x1da   : > { %v706_v19 = vpop.f32.mrb[2].mxu1  ;;  %v633_v20 = vmul.f32 %v1522_v11, %v620_v16  ;;  %v1589_v21 = vpop.f32.mrb[1].mxu0 }
 0x1db   : > { %v724_v22 = vadd.f32 %v1528_v13, %v716_v14  ;;  %v1598_v23 = vpop.f32.mrb[3].mxu1  ;;  %v623_v25 = vpop.f32.mrb[2].mxu0 }
 0x1dc   : > { %v641_v26 = vadd.f32 %v1523_v17, %v633_v20  ;;  %v1590_v27 = vpop.f32.mrb[3].mxu0 }
 0x1dd   : > { %v726_v28 = vsub.f32 %v724_v22, %v725_v18 }
 0x1de   : > { %v643_v29 = vsub.f32 %v641_v26, %v642_v24 }
 0x1df   : > { %v727_v30 = vmul.f32 0.5, %v726_v28 }
 0x1e0   : > { %v644_v31 = vmul.f32 0.5, %v643_v29 }
 0x1e1   : > { %v728_v32 = vadd.f32 %v727_v30, %v725_v18  ;;  %v785_v45 = vpop.f32.mrb[4].mxu0 }
 0x1e2   : > { %v645_v33 = vadd.f32 %v644_v31, %v642_v24  ;;  %v798_v48 = vmul.f32 %v1532_v46, %v785_v45  ;;  %v1605_v49 = vpop.f32.mrb[5].mxu0 }
 0x1e3   : > { %vm729_vm3 = vcmp.ge.f32.partialorder %v728_v32, 1.0  ;;  %v788_v51 = vpop.f32.mrb[6].mxu0 }
 0x1e4   : > { %v730_v34 = vsel %vm729_vm3, 0.0, %v728_v32  ;;  %v732_v35 = vsel %vm729_vm3, 1.0, %v2144_v2  ;;  %vm646_vm5 = vcmp.ge.f32.partialorder %v645_v33, 1.0  ;;  %v806_v52 = vadd.f32 %v1533_v47, %v798_v48  ;;  %v1606_v53 = vpop.f32.mrb[7].mxu0 }
 0x1e5   : > { %731 = vst.msk [vmem:[#allocation3] sm:$0xff] %vm582_vm2, %v730_v34  ;;  %v733_v36 = vpack.c.bf16 %v732_v35, %v732_v35  ;;  %v647_v37 = vsel %vm646_vm5, 0.0, %v645_v33  ;;  %v649_v38 = vsel %vm646_vm5, 1.0, %v2144_v2  ;;  %v1822_v53 = vld [vmem:[%s2762_s28] sm:$0xff]   ;;  %s1551_s28 = sshll.u32 %s2764_s4, 1  ;;  %s1339_s4 = scalar_lea.sflag [#allocation13], %s2508_s16 }
 0x1e6   : > { %648 = vst.msk [vmem:[#allocation2] sm:$0xff] %vm582_vm2, %v647_v37  ;;  %v650_v39 = vpack.c.bf16 %v649_v38, %v649_v38  ;;  %v808_v54 = vsub.f32 %v806_v52, %v807_v50 }
 0x1e7   : > { %734 = vst.msk [vmem:[#allocation8] sm:$0xf] %vm651_vm4, %v733_v36 }
 0x1e8   : > { %652 = vst.msk [vmem:[#allocation7] sm:$0xf] %vm651_vm4, %v650_v39  ;;  %v809_v55 = vmul.f32 0.5, %v808_v54 }
 0x1ea   : > { %v810_v56 = vadd.f32 %v809_v55, %v807_v50 }
 0x1ec   : > { %vm811_vm7 = vcmp.ge.f32.partialorder %v810_v56, 1.0 }
 0x1ed   : > { %v812_v57 = vsel %vm811_vm7, 0.0, %v810_v56  ;;  %v814_v58 = vsel %vm811_vm7, 1.0, %v2144_v2  ;;  %v1823_v56 = vld [vmem:[%s2763_s22 + $0x8] sm:$0xff]  }
 0x1ee   : > { %v818_v40 = vld [vmem:[#allocation8] sm:$0xf]  ;;  %813 = vst.msk [vmem:[#allocation4] sm:$0xff] %vm582_vm2, %v812_v57  ;;  %v815_v59 = vpack.c.bf16 %v814_v58, %v814_v58 }
 0x1ef   : > { %v825_v41 = vsel %vm820_vm6, %v818_v40, 0  ;;  %v1537_v42 = vcombine.low %v818_v40, %v818_v40  ;;  %v817_v43 = vld [vmem:[#allocation7] sm:$0xf] }
 0x1f0   : > { %1608 = vmatpush3.bf16.xpose.msra.mxu1 %v825_v41  ;;  %v1536_v44 = vcombine.low %v817_v43, %v817_v43  ;;  %816 = vst.msk [vmem:[#allocation9] sm:$0xf] %vm651_vm4, %v815_v59 }
 0x1f1   : > { %1027 = vrot.lane.b32.xlu1 %v1537_v42, %s2146_s29  ;;  %924 = vrot.lane.b32.xlu0 %v1537_v42, %s2147_s23 }
 0x1f2   : > { %1619 = vmatprep.subr.bf16.mxu1 %v2144_v2 }
 0x1f5   : > { %919 = vrot.lane.b32.xlu0 %v1536_v44, %s2147_s23  ;;  %1025 = vrot.lane.b32.xlu1 %v1536_v44, %s2146_s29 }
 0x1f7   : > { %1610 = vmatmul.mubr.msk.bf16.vlgmr.msra.gmra.mrb[4].mxu1 %vm820_vm6, %v817_v43  ;;  %v819_v60 = vld [vmem:[#allocation9] sm:$0xf] }
 0x1f8   : > { %1621 = vmatprep.mubr.msk.bf16.mxu1 %vm2145_vm1, %v2144_v2  ;;  %v1539_v61 = vcombine.low %v819_v60, %v819_v60  ;;  %v873_v62 = vsel %vm871_vm8, %v819_v60, 0 }
 0x1f9   : > { %1127 = vrot.lane.b32.xlu0 %v1537_v42, %s2148_s18  ;;  %1125 = vrot.lane.b32.xlu1 %v1536_v44, %s2148_s18 }
 0x1fa   : > { %1614 = vmatpush3.bf16.msra.mxu0 %v873_v62 }
 0x1fb   : > { %1625 = vmatprep.subr.bf16.mxu0 %v2144_v2 }
 0x1fd   : > { %976 = vrot.lane.b32.xlu0 %v1539_v61, %s2147_s23  ;;  %1076 = vrot.lane.b32.xlu1 %v1539_v61, %s2146_s29  ;;  %s2765_s29 = sld [smem:[#allocation30_spill]] }
 0x201   : > { %1176 = vrot.lane.b32.xlu0 %v1539_v61, %s2148_s18  ;;  %v1242_v61 = vld [vmem:[#allocation5] sm:$0xff] }
 0x263   : > { %v925_v63 = vpop.permute.xlu0 %924  ;;  %v1028_v1 = vpop.permute.xlu1 %1027 }
 0x264   : > { %v930_v0 = vsel %vm820_vm6, %v925_v63, 0  ;;  %v1033_v4 = vsel %vm820_vm6, %v1028_v1, 0 }
 0x265   : > { %1620 = vmatpush3.bf16.xpose.msra.mxu1 %v930_v0 }
 0x266   : > { %1631 = vmatprep.subr.bf16.mxu1 %v2144_v2 }
 0x267   : > { %v920_v3 = vpop.permute.xlu0 %919  ;;  %v1026_v7 = vpop.permute.xlu1 %1025 }
 0x26b   : > { %v1128_v6 = vpop.permute.xlu0 %1127  ;;  %v1126_v9 = vpop.permute.xlu1 %1125 }
 0x26c   : > { %1622 = vmatmul.mubr.msk.bf16.vlgmr.msra.gmra.mrb[8].mxu1 %vm820_vm6, %v920_v3  ;;  %v1133_v8 = vsel %vm820_vm6, %v1128_v6, 0 }
 0x26d   : > { %1632 = vmatpush3.bf16.xpose.msra.mxu1 %v1033_v4  ;;  %1633 = vmatprep.mubr.msk.bf16.mxu1 %vm2145_vm1, %v2144_v2 }
 0x26e   : > { %1643 = vmatprep.subr.bf16.mxu1 %v2144_v2 }
 0x26f   : > { %v977_v11 = vpop.permute.xlu0 %976  ;;  %v1077_v17 = vpop.permute.xlu1 %1076 }
 0x270   : > { %v982_v14 = vsel %vm871_vm8, %v977_v11, 0  ;;  %v1082_v22 = vsel %vm871_vm8, %v1077_v17, 0 }
 0x273   : > { %v1177_v24 = vpop.permute.xlu0 %1176 }
 0x274   : > { %1634 = vmatmul.mubr.msk.bf16.vlgmr.msra.gmra.mrb[12].mxu1 %vm820_vm6, %v1026_v7  ;;  %v1182_v29 = vsel %vm871_vm8, %v1177_v24, 0 }
 0x275   : > { %1644 = vmatpush3.bf16.xpose.msra.mxu1 %v1133_v8  ;;  %1645 = vmatprep.mubr.msk.bf16.mxu1 %vm2145_vm1, %v2144_v2 }
 0x276   : > { %1655 = vmatprep.subr.bf16.mxu1 %v2144_v2 }
 0x27c   : > { %1646 = vmatmul.mubr.msk.bf16.vlgmr.msra.gmra.mrb[16].mxu1 %vm820_vm6, %v1126_v9 }
 0x27d   : > { %1659 = vmatprep.mubr.msk.bf16.mxu1 %vm2145_vm1, %v2144_v2  ;;  %1656 = vmatpush3.bf16.msra.mxu1 %v1822_v53 }
 0x27e   : > { %1657 = vmatprep.subr.bf16.mxu1 %v2144_v2 }
 0x281   : > { %1658 = vmatpush3.bf16.msra.mxu1 %v1823_v56 }
 0x2ca   : > { %v861_v10 = vpop.f32.mrb[4].mxu1 }
 0x2cb   : > { %v867_v12 = vpack.c.bf16 %v861_v10, %v861_v10  ;;  %v1611_v13 = vpop.f32.mrb[5].mxu1 }
 0x2cc   : > { %v864_v15 = vpop.f32.mrb[6].mxu1 }
 0x2cd   : > { %v1612_v16 = vpop.f32.mrb[7].mxu1  ;;  %1616 = vmatmul.mubr.msk.bf16.vlgmr.msra.gmra.mrb[8].mxu0 %vm820_vm6, %v867_v12  ;;  %v1549_v12 = vld [vmem:[%s2767_s2] ss:$0 sm:$0xff]  ;;  %s2026_s2 = sshll.u32 %s2152_s12, 4  ;;  %s2027_s2 = int_to_ptr.vmem [resolvable:$false] %s2026_s2 }
 0x2ce   : > { %1626 = vmatpush3.bf16.msra.mxu0 %v982_v14  ;;  %1627 = vmatprep.mubr.msk.bf16.mxu0 %vm2145_vm1, %v2144_v2  ;;  %v1328_v15 = vld [vmem:[#allocation6] sm:$0xff]  ;;  %p2029_p8 = scmp.lt.s32.totalorder %s2652_s1, %s2027_s2 }
 0x2cf   : > { %1637 = vmatprep.subr.bf16.mxu0 %v2144_v2 }
 0x33f   : > { %v966_v18 = vpop.f32.mrb[8].mxu1 }
 0x340   : > { %v972_v19 = vpack.c.bf16 %v966_v18, %v966_v18  ;;  %v1623_v20 = vpop.f32.mrb[9].mxu1 }
 0x341   : > { %v969_v21 = vpop.f32.mrb[10].mxu1 }
 0x342   : > { %v1624_v23 = vpop.f32.mrb[11].mxu1  ;;  %1628 = vmatmul.mubr.msk.bf16.vlgmr.msra.gmra.mrb[12].mxu0 %vm820_vm6, %v972_v19 }
 0x343   : > { %1638 = vmatpush3.bf16.msra.mxu0 %v1082_v22  ;;  %1639 = vmatprep.mubr.msk.bf16.mxu0 %vm2145_vm1, %v2144_v2 }
 0x344   : > { %1649 = vmatprep.subr.bf16.mxu0 %v2144_v2 }
 0x347   : > { %v1069_v25 = vpop.f32.mrb[12].mxu1 }
 0x348   : > { %v1075_v26 = vpack.c.bf16 %v1069_v25, %v1069_v25  ;;  %v1635_v27 = vpop.f32.mrb[13].mxu1 }
 0x349   : > { %v1072_v28 = vpop.f32.mrb[14].mxu1 }
 0x34a   : > { %v1636_v30 = vpop.f32.mrb[15].mxu1  ;;  %1640 = vmatmul.mubr.msk.bf16.vlgmr.msra.gmra.mrb[16].mxu0 %vm820_vm6, %v1075_v26 }
 0x34b   : > { %1650 = vmatpush3.bf16.msra.mxu0 %v1182_v29  ;;  %1651 = vmatprep.mubr.msk.bf16.mxu0 %vm2145_vm1, %v2144_v2 }
 0x34f   : > { %v1169_v31 = vpop.f32.mrb[16].mxu1 }
 0x350   : > { %v1175_v32 = vpack.c.bf16 %v1169_v31, %v1169_v31  ;;  %v1647_v33 = vpop.f32.mrb[17].mxu1 }
 0x351   : > { %v1172_v34 = vpop.f32.mrb[18].mxu1 }
 0x352   : > { %v1648_v35 = vpop.f32.mrb[19].mxu1  ;;  %1652 = vmatmul.mubr.msk.bf16.vlgmr.msra.gmra.mrb[20].mxu0 %vm820_vm6, %v1175_v32 }
 0x3a0   : > { %v909_v36 = vpop.f32.mrb[8].mxu0 }
 0x3a1   : > { %v1617_v37 = vpop.f32.mrb[9].mxu0  ;;  %v915_v58 = vmul.f32 0.125, %v909_v36 }
 0x3a2   : > { %v912_v38 = vpop.f32.mrb[10].mxu0 }
 0x3a3   : > { %v1618_v39 = vpop.f32.mrb[11].mxu0 }
 0x415   : > { %v1018_v40 = vpop.f32.mrb[12].mxu0 }
 0x416   : > { %v1024_v41 = vmul.f32 0.125, %v1018_v40  ;;  %v1629_v42 = vpop.f32.mrb[13].mxu0 }
 0x417   : > { %v1021_v43 = vpop.f32.mrb[14].mxu0 }
 0x418   : > { %1226 = vrot.lane.b32.xlu1 %v1024_v41, %s2149_s17  ;;  %v1630_v44 = vpop.f32.mrb[15].mxu0  ;;  %s2766_s17 = sld [smem:[#allocation38_spill]] }
 0x41d   : > { %v1118_v45 = vpop.f32.mrb[16].mxu0 }
 0x41e   : > { %v1124_v46 = vmul.f32 0.125, %v1118_v45  ;;  %v1641_v47 = vpop.f32.mrb[17].mxu0  ;;  %v1548_v10 = vld [vmem:[%s2766_s17] ss:$0 sm:$0xff]  ;;  %s2768_s17 = sld [smem:[#allocation40_spill]] }
 0x41f   : > { %v1121_v48 = vpop.f32.mrb[18].mxu0 }
 0x420   : > { %1230 = vrot.lane.b32.xlu0 %v1124_v46, %s2150_s24  ;;  %v1642_v49 = vpop.f32.mrb[19].mxu0 }
 0x425   : > { %v1218_v50 = vpop.f32.mrb[20].mxu0 }
 0x426   : > { %v1224_v51 = vmul.f32 0.125, %v1218_v50  ;;  %v1653_v52 = vpop.f32.mrb[21].mxu0 }
 0x427   : > { %v1221_v54 = vpop.f32.mrb[22].mxu0 }
 0x428   : > { %1234 = vrot.lane.b32.xlu1 %v1224_v51, %s2151_s7  ;;  %v1654_v55 = vpop.f32.mrb[23].mxu0  ;;  %s1350_s7 = sadd.s32 %s2765_s29, %s1551_s28  ;;  %s2022_s29 = scalar_lea.vmem %s2652_s1, 128 }
 0x429   : > { %s1552_s20 = sshll.u32 %s1350_s7, 7  ;;  %p2023_p9 = scmp.ne.s32.totalorder %s2652_s1, %s2022_s29 }
 0x42a   : > { %s2650_s24 = scalar_lea.hbm %s2768_s17, %s1552_s20  ;;  %s2028_s28 = scalar_lea.vmem %s2027_s2, 256 }
 0x42b   : > { %p2024_p3 = pnand %p2023_p9, %p2769_p7  ;;  %p2030_p10 = scmp.lt.s32.totalorder %s2028_s28, %s2022_s29 }
 0x42d   : > { %p2025_p6 = pneg %p2024_p3  ;;  %p2031_p1 = por %p2030_p10, %p2029_p8 }
 0x42f   : > { %p2032_p11 = pnand %p2031_p1, %p2025_p6 }
 0x48a   : > { %v1227_v57 = vpop.permute.xlu1 %1226 }
 0x48b   : > { %v1237_v60 = vsel %vm820_vm6, %v915_v58, %v1227_v57 }
 0x492   : > { %v1231_v59 = vpop.permute.xlu0 %1230 }
 0x493   : > { %v1239_v62 = vsel %vm1238_vm9, %v1237_v60, %v1231_v59 }
 0x49a   : > { %v1235_v63 = vpop.permute.xlu1 %1234 }
 0x49b   : > { %v1241_v0 = vsel %vm1240_vm10, %v1239_v62, %v1235_v63 }
 0x49c   : > { %v1243_v1 = vsub.f32 %v1241_v0, %v1242_v61 }
 0x49e   : > { %v1244_v3 = vmul.f32 0.5, %v1243_v1 }
 0x4a0   : > { %v1245_v4 = vadd.f32 %v1244_v3, %v1242_v61 }
 0x4a2   : > { %vm1246_vm11 = vcmp.ge.f32.partialorder %v1245_v4, 0.5 }
 0x4a3   : > { %v1247_v6 = vsel %vm1246_vm11, 0.0, %v1245_v4  ;;  %v1249_v7 = vsel %vm1246_vm11, 1.0, %v2144_v2 }
 0x4a4   : > { %1248 = vst.msk [vmem:[#allocation5] sm:$0xff] %vm582_vm2, %v1247_v6  ;;  %v1250_v8 = vpack.c.bf16 %v1249_v7, %v1249_v7 }
 0x4a6   : > { %1251 = vst.msk [vmem:[#allocation10] sm:$0xf] %vm651_vm4, %v1250_v8 }
 0x4ad   : > { %v1252_v9 = vld [vmem:[#allocation10] sm:$0xf] }
 0x4ae   : > { %1660 = vmatmul.mubr.msk.bf16.vlgmr.msra.gmra.mrb[20].mxu1 %vm582_vm2, %v1252_v9 }
 0x581   : > { %v1306_v11 = vpop.f32.mrb[20].mxu1 }
 0x582   : > { %v1319_v13 = vmul.f32 %v1548_v10, %v1306_v11  ;;  %v1661_v14 = vpop.f32.mrb[21].mxu1 }
 0x583   : > { %v1309_v16 = vpop.f32.mrb[22].mxu1 }
 0x584   : > { %v1327_v17 = vadd.f32 %v1549_v12, %v1319_v13  ;;  %v1662_v18 = vpop.f32.mrb[23].mxu1 }
 0x586   : > { %v1329_v19 = vsub.f32 %v1327_v17, %v1328_v15 }
 0x588   : > { %v1330_v20 = vmul.f32 0.5, %v1329_v19 }
 0x58a   : > { %v1331_v21 = vadd.f32 %v1330_v20, %v1328_v15 }
 0x58c   : > { %vm1332_vm12 = vcmp.ge.f32.partialorder %v1331_v21, 1.0 }
 0x58d   : > { %v1333_v22 = vsel %vm1332_vm12, 0.0, %v1331_v21  ;;  %v1335_v23 = vsel %vm1332_vm12, 1.0, %v2144_v2 }
 0x58e   : > { %1334 = vst.msk [vmem:[#allocation6] sm:$0xff] %vm582_vm2, %v1333_v22  ;;  %v1336_v24 = vadd.f32 %v1335_v23, %v2539_v5 }
 0x590   : > { %1337 = vst.msk [vmem:[%s2530_s5] sm:$0xff] %vm582_vm2, %v1336_v24 }
 0x591   : > { %2035 = shalt.err (!%p2032_p11)
}
 0x592   : > { %s2036_s16 = scalar_lea.hbm %s2650_s24, 128  ;;  %s2040_s20 = scalar_lea.hbm %s2768_s17, 1024 }
 0x593   : > { %p2037_p5 = scmp.ne.s32.totalorder %s2650_s24, %s2036_s16  ;;  %p2041_p12 = scmp.lt.u32.totalorder %s2650_s24, %s2768_s17 }
 0x594   : > { %p2042_p2 = scmp.lt.u32.totalorder %s2040_s20, %s2036_s16  ;;  %p2044_p9 = scmp.lt.u32.totalorder %s2036_s16, %s2650_s24 }
 0x595   : > { %p2038_p13 = pnand %p2037_p5, %p2769_p7 }
 0x596   : > { %p2043_p0 = por %p2042_p2, %p2041_p12 }
 0x597   : > { %p2039_p4 = pneg %p2038_p13 }
 0x598   : > { %p2045_p3 = por %p2044_p9, %p2043_p0 }
 0x59a   : > { %p2046_p6 = pnand %p2045_p3, %p2039_p4 }
 0x59c   : > { %2049 = shalt.err (!%p2046_p6)
}
 0x59d   : > { %1689 = dma.vmem_to_hbm [thread:$0]  (%p2769_p7), %s2652_s1, 128, %s2650_s24, %s1339_s4  }
 0x59e PF: > { %p1731_p8 = scmp.ge.s32.totalorder %s2132_s15, 2  ;;  %s1366_s29 = sand.u32 1, %s2104_s25  }
 0x59f   : > { %p2770_p10 = scmp.ne.s32.totalorder %s2754_s3, 0  ;;  %s1367_s12 = scalar_lea.sflag [#allocation13], %s1366_s29 }
 0x5a1   : > { %p1715_p1 = pnand %p1731_p8, %p2770_p10 }
 0x5a3   : > { %2099 = dma.done.wait (!%p1715_p1), %s1367_s12, 128  }
 0x5a4   : > { %2101 = vsyncadd (!%p1715_p1), %s1367_s12, 4294967168  ;;  %s32_s15 = sadd.s32 1, %s2132_s15   ;;  %s2771_s25 = smov %s2108_s26 }
 0x5a5   : > { %p29_p11 = scmp.ge.s32.totalorder %s32_s15, 10   ;;  %s2772_s26 = smov %s2112_s27 }
 0x5a6   : > { %s2773_s27 = smov %s2463_s13  ;;  %s2774_s28 = smov %s2124_s30 }
 0x5a7   : > { %s2775_s29 = smov %s2128_s14  ;;  %s2776_s30 = smov %s2779_s10 }
 0x5a8   : > { %s2777_s14 = smov %s2783_s21  ;;  %31 = sbr.rel (!%p29_p11) target bundleno = 21 (0x15), region = 145 }
 0x5af   :  { %1372 = vsyncpa [#allocation12], 1 }
 0x5b0   :  { %1374 = vsyncpa [#allocation12 + $0x1], 1 }
 0x5b1   :  { %1375 = vsyncpa [#allocation15], 1 }
 0x5b2   :  { %1376 = vsyncpa [#allocation18], 1 }
 0x5b3   :  { %1377 = vsyncpa [#allocation21], 1 }
 0x5b4   :  { %1378 = vsyncpa [#allocation13], 1 }
 0x5b5   :  { %1380 = vsyncpa [#allocation13 + $0x1], 1 }

</bundles_post_ra>
